<compile_context>
chip_gen: v7x
topology: tpu7x:2x2x1
jax: 0.10.0
libtpu: 0.0.40
codegen_flags: <defaults>
</compile_context>

<pallas_src>
import jax
import jax.numpy as jnp
from jax.experimental import pallas as pl
from jax.experimental.pallas import tpu as pltpu


# ----------------------------------------------------------------------------
# Fused kernel factory.
# refs layout: x(S*B,Din),
#              layer0: w_ih0_t(Din,4H), w_hh0_t(H,4H), b0(1,4H),
#              layer l>=1: w_cat_t(2H,4H), b_l(1,4H),
#              w_lin_t(H,OUTP), b_lin(1,OUTP)  ->  out(S*B,OUTP)
# Rows are time-major: row index = t * B + b.
# ----------------------------------------------------------------------------
def _make_fused_kernel(num_layers, seq_len, batch, hidden):
    S, B, H, L = seq_len, batch, hidden, num_layers

    def kernel(*refs):
        x_ref = refs[0]
        w_ih0 = refs[1][...]            # (Din, 4H)  i/f/o columns pre-scaled 0.5
        w_hh0 = refs[2][...]            # (H, 4H)
        b0 = refs[3][...]               # (1, 4H)
        deep = []
        idx = 4
        for _ in range(L - 1):
            deep.append((refs[idx][...], refs[idx + 1][...]))  # (2H,4H), (1,4H)
            idx += 2
        w_lin = refs[idx][...]          # (H, OUTP)  zero-padded to 128 lanes
        b_lin = refs[idx + 1][...]      # (1, OUTP)
        out_ref = refs[idx + 2]         # (S*B, OUTP)

        # Layer-0 input projection for every timestep: one MXU matmul, bias folded.
        gx0 = jnp.dot(x_ref[...], w_ih0,
                      preferred_element_type=jnp.float32) + b0     # (S*B, 4H)

        def cell(gates, c):
            # i/f/o pre-activations arrive pre-scaled by 0.5:
            #   sigmoid(z) = 0.5 * tanh(z/2) + 0.5
            t = jnp.tanh(gates)          # single EUP pass over the (B, 4H) tile
            s = 0.5 * t + 0.5            # cheap VPU fma
            i_g = s[:, 0:H]
            f_g = s[:, H:2 * H]
            g_g = t[:, 2 * H:3 * H]
            o_g = s[:, 3 * H:4 * H]
            c_new = f_g * c + i_g * g_g
            h_new = o_g * jnp.tanh(c_new)
            return h_new, c_new

        zero = jnp.zeros((B, H), jnp.float32)
        h = [zero] * L
        c = [zero] * L
        h_last = [None] * S              # last layer's per-step hidden states

        # Wavefront over (layer, time): at wave w, layer l runs step t = w - l.
        # All layers within a wave are data-independent -> their MXU/VPU/EUP
        # chains interleave in the VLIW bundles.
        for wave in range(S + L - 1):
            h_prev = list(h)             # reads use previous-wave values
            for l in range(L):
                t = wave - l
                if 0 <= t < S:
                    if l == 0:
                        gates = gx0[t * B:(t + 1) * B, :] + jnp.dot(
                            h_prev[0], w_hh0, preferred_element_type=jnp.float32)
                    else:
                        w_cat, b_l = deep[l - 1]
                        lhs = jnp.concatenate([h_prev[l - 1], h_prev[l]], axis=1)
                        gates = jnp.dot(lhs, w_cat,
                                        preferred_element_type=jnp.float32) + b_l
                    h_new, c_new = cell(gates, c[l])
                    h[l] = h_new
                    c[l] = c_new
                    if l == L - 1:
                        h_last[t] = h_new

        # Single concat per kernel (not per step): time-major (S*B, H) slab.
        h_all = jnp.concatenate(h_last, axis=0)
        y = jnp.dot(h_all, w_lin, preferred_element_type=jnp.float32) + b_lin
        out_ref[...] = y.astype(out_ref.dtype)           # unmasked (S*B,128) store

    return kernel


# ----------------------------------------------------------------------------
# Parameter init (deterministic, PyTorch-style uniform(-1/sqrt(H), 1/sqrt(H)))
# ----------------------------------------------------------------------------
def init_params(key, input_size, hidden_size, num_layers, out_features=16 * 3):
    k = 1.0 / float(hidden_size) ** 0.5
    keys = jax.random.split(key, 4 * num_layers + 2)
    idx = 0
    lstm_params = []
    for layer in range(num_layers):
        din = input_size if layer == 0 else hidden_size
        w_ih = jax.random.uniform(keys[idx], (4 * hidden_size, din),
                                  minval=-k, maxval=k, dtype=jnp.float32); idx += 1
        w_hh = jax.random.uniform(keys[idx], (4 * hidden_size, hidden_size),
                                  minval=-k, maxval=k, dtype=jnp.float32); idx += 1
        b_ih = jax.random.uniform(keys[idx], (4 * hidden_size,),
                                  minval=-k, maxval=k, dtype=jnp.float32); idx += 1
        b_hh = jax.random.uniform(keys[idx], (4 * hidden_size,),
                                  minval=-k, maxval=k, dtype=jnp.float32); idx += 1
        lstm_params.append((w_ih, w_hh, b_ih, b_hh))
    w = jax.random.uniform(keys[idx], (out_features, hidden_size),
                           minval=-k, maxval=k, dtype=jnp.float32); idx += 1
    b = jax.random.uniform(keys[idx], (out_features,),
                           minval=-k, maxval=k, dtype=jnp.float32)
    return {"lstm": lstm_params, "linear": (w, b)}


def prepare_kernel_params(params):
    """One-time weight transforms: transpose, 0.5 gate pre-scale (i/f/o),
    W_ih/W_hh fusion for layers >= 1, lane-padded (128) final Linear."""
    H = params["lstm"][0][1].shape[1]
    gate_scale = jnp.concatenate([
        jnp.full((H,), 0.5, jnp.float32),      # i
        jnp.full((H,), 0.5, jnp.float32),      # f
        jnp.ones((H,), jnp.float32),           # g (stays a plain tanh gate)
        jnp.full((H,), 0.5, jnp.float32),      # o
    ])[None, :]                                # (1, 4H)

    layers = []
    for idx, (w_ih, w_hh, b_ih, b_hh) in enumerate(params["lstm"]):
        w_ih_t = jnp.transpose(w_ih) * gate_scale          # (Din, 4H)
        w_hh_t = jnp.transpose(w_hh) * gate_scale          # (H, 4H)
        b_row = (b_ih + b_hh)[None, :] * gate_scale        # (1, 4H)
        if idx == 0:
            layers.append((w_ih_t, w_hh_t, b_row))
        else:
            # Fused per-step matmul: [h_{l-1}[t], h_l[t-1]] @ [[W_ih^T];[W_hh^T]]
            layers.append((jnp.concatenate([w_ih_t, w_hh_t], axis=0), b_row))

    w, b = params["linear"]
    out_features, hidden = w.shape
    out_pad = ((out_features + 127) // 128) * 128
    w_lin_t = jnp.zeros((hidden, out_pad), jnp.float32).at[:, :out_features].set(
        jnp.transpose(w))
    b_lin = jnp.zeros((1, out_pad), jnp.float32).at[:, :out_features].set(b[None, :])
    return {"layers": layers, "linear": (w_lin_t, b_lin),
            "hidden": H, "out_features": out_features}


# ----------------------------------------------------------------------------
# Forward (matches Seq2SeqLSTM.forward): output, _ = lstm(x); out = linear(output)
# ----------------------------------------------------------------------------
def seq2seq_lstm_forward(kparams, x_bf):
    # x_bf: (B, S, input_size), batch-first like the PyTorch module
    B, S, Din = x_bf.shape
    layers = kparams["layers"]
    w_lin_t, b_lin = kparams["linear"]
    H = kparams["hidden"]
    F = kparams["out_features"]
    L = len(layers)
    out_pad = w_lin_t.shape[1]

    # time-major, flattened so row index = t * B + b
    x_tm = jnp.transpose(x_bf, (1, 0, 2)).astype(jnp.float32).reshape(S * B, Din)

    flat = [x_tm] + list(layers[0])
    for l in range(1, L):
        flat += list(layers[l])
    flat += [w_lin_t, b_lin]

    y = pl.pallas_call(
        _make_fused_kernel(L, S, B, H),
        out_shape=jax.ShapeDtypeStruct((S * B, out_pad), jnp.float32),
        in_specs=[pl.BlockSpec(memory_space=pltpu.MemorySpace.VMEM)
                  for _ in flat],
        out_specs=pl.BlockSpec(memory_space=pltpu.MemorySpace.VMEM),
    )(*flat)

    # (S*B, out_pad) -> slice padded lanes -> (B, S, F)
    return jnp.transpose(y[:, :F].reshape(S, B, F), (1, 0, 2))


# ----------------------------------------------------------------------------
# Pure-JAX reference (lax.scan, unscaled params) for correctness check
# ----------------------------------------------------------------------------
def reference_forward(params, x_bf):
    x = jnp.transpose(x_bf, (1, 0, 2)).astype(jnp.float32)
    for (w_ih, w_hh, b_ih, b_hh) in params["lstm"]:
        H = w_hh.shape[1]
        B = x.shape[1]

        def step(carry, x_t):
            h, c = carry
            gates = x_t @ w_ih.T + b_ih + h @ w_hh.T + b_hh
            i = jax.nn.sigmoid(gates[:, 0:H])
            f = jax.nn.sigmoid(gates[:, H:2 * H])
            g = jnp.tanh(gates[:, 2 * H:3 * H])
            o = jax.nn.sigmoid(gates[:, 3 * H:4 * H])
            c = f * c + i * g
            h = o * jnp.tanh(c)
            return (h, c), h

        init = (jnp.zeros((B, H), jnp.float32), jnp.zeros((B, H), jnp.float32))
        _, x = jax.lax.scan(step, init, x)
    w, b = params["linear"]
    y = x @ w.T + b
    return jnp.transpose(y, (1, 0, 2))


if __name__ == "__main__":
    INPUT_SIZE, HIDDEN, NUM_LAYERS = 48, 32, 2
    BATCH, SEQ = 2, 8

    key = jax.random.PRNGKey(0)
    pkey, xkey = jax.random.split(key)
    params = init_params(pkey, INPUT_SIZE, HIDDEN, NUM_LAYERS)
    kparams = prepare_kernel_params(params)
    x = jax.random.normal(xkey, (BATCH, SEQ, INPUT_SIZE), dtype=jnp.float32)

    out = seq2seq_lstm_forward(kparams, x)
    out = jax.block_until_ready(out)

    ref = reference_forward(params, x)
    assert out.shape == (BATCH, SEQ, 16 * 3), out.shape
    assert jnp.allclose(out, ref, atol=1e-4, rtol=1e-4), float(
        jnp.max(jnp.abs(out - ref)))

    print("KERNEL_OK")
</pallas_src>

<mosaic_0001>
module attributes {stable_mosaic.version = 11 : i64} {
  func.func @kernel(%arg0: memref<16x48xf32, #tpu.memory_space<vmem>>, %arg1: memref<48x128xf32, #tpu.memory_space<vmem>>, %arg2: memref<32x128xf32, #tpu.memory_space<vmem>>, %arg3: memref<1x128xf32, #tpu.memory_space<vmem>>, %arg4: memref<64x128xf32, #tpu.memory_space<vmem>>, %arg5: memref<1x128xf32, #tpu.memory_space<vmem>>, %arg6: memref<32x128xf32, #tpu.memory_space<vmem>>, %arg7: memref<1x128xf32, #tpu.memory_space<vmem>>, %arg8: memref<16x128xf32, #tpu.memory_space<vmem>>) attributes {dimension_semantics = [], scalar_prefetch = 0 : i64, scratch_operands = 0 : i64, tpu.core_type = #tpu.core_type<tc>} {
    %c0 = arith.constant 0 : index
    %c0_0 = arith.constant 0 : index
    %0 = vector.load %arg1[%c0, %c0_0] : memref<48x128xf32, #tpu.memory_space<vmem>>, vector<48x128xf32>
    %c0_1 = arith.constant 0 : index
    %c0_2 = arith.constant 0 : index
    %1 = vector.load %arg2[%c0_1, %c0_2] : memref<32x128xf32, #tpu.memory_space<vmem>>, vector<32x128xf32>
    %c0_3 = arith.constant 0 : index
    %c0_4 = arith.constant 0 : index
    %2 = vector.load %arg3[%c0_3, %c0_4] : memref<1x128xf32, #tpu.memory_space<vmem>>, vector<1x128xf32>
    %c0_5 = arith.constant 0 : index
    %c0_6 = arith.constant 0 : index
    %3 = vector.load %arg4[%c0_5, %c0_6] : memref<64x128xf32, #tpu.memory_space<vmem>>, vector<64x128xf32>
    %c0_7 = arith.constant 0 : index
    %c0_8 = arith.constant 0 : index
    %4 = vector.load %arg5[%c0_7, %c0_8] : memref<1x128xf32, #tpu.memory_space<vmem>>, vector<1x128xf32>
    %c0_9 = arith.constant 0 : index
    %c0_10 = arith.constant 0 : index
    %5 = vector.load %arg6[%c0_9, %c0_10] : memref<32x128xf32, #tpu.memory_space<vmem>>, vector<32x128xf32>
    %c0_11 = arith.constant 0 : index
    %c0_12 = arith.constant 0 : index
    %6 = vector.load %arg7[%c0_11, %c0_12] : memref<1x128xf32, #tpu.memory_space<vmem>>, vector<1x128xf32>
    %c0_13 = arith.constant 0 : index
    %c0_14 = arith.constant 0 : index
    %7 = vector.load %arg0[%c0_13, %c0_14] : memref<16x48xf32, #tpu.memory_space<vmem>>, vector<16x48xf32>
    %cst = arith.constant dense<0.000000e+00> : vector<16x128xf32>
    %8 = tpu.matmul %7, %0, %cst {dimension_numbers = #tpu.dot_dimension_numbers<[1], [0], [0], [1], [0, 0, 1, 1], [], []>} : vector<16x48xf32>, vector<48x128xf32>, vector<16x128xf32> -> vector<16x128xf32>
    %9 = vector.broadcast %2 : vector<1x128xf32> to vector<16x128xf32>
    %10 = arith.addf %8, %9 : vector<16x128xf32>
    %cst_15 = arith.constant 0.000000e+00 : f32
    %11 = vector.broadcast %cst_15 : f32 to vector<2x32xf32>
    %12 = vector.extract_strided_slice %10 {offsets = [0, 0], sizes = [2, 128], strides = [1, 1]} : vector<16x128xf32> to vector<2x128xf32>
    %cst_16 = arith.constant dense<0.000000e+00> : vector<2x128xf32>
    %13 = tpu.matmul %11, %1, %cst_16 {dimension_numbers = #tpu.dot_dimension_numbers<[1], [0], [0], [1], [0, 0, 1, 1], [], []>} : vector<2x32xf32>, vector<32x128xf32>, vector<2x128xf32> -> vector<2x128xf32>
    %14 = arith.addf %12, %13 : vector<2x128xf32>
    %15 = math.tanh %14 : vector<2x128xf32>
    %cst_17 = arith.constant 5.000000e-01 : f32
    %16 = vector.broadcast %cst_17 : f32 to vector<2x128xf32>
    %17 = arith.mulf %16, %15 : vector<2x128xf32>
    %cst_18 = arith.constant 5.000000e-01 : f32
    %18 = vector.broadcast %cst_18 : f32 to vector<2x128xf32>
    %19 = arith.addf %17, %18 : vector<2x128xf32>
    %20 = vector.extract_strided_slice %19 {offsets = [0, 0], sizes = [2, 32], strides = [1, 1]} : vector<2x128xf32> to vector<2x32xf32>
    %21 = vector.extract_strided_slice %19 {offsets = [0, 32], sizes = [2, 32], strides = [1, 1]} : vector<2x128xf32> to vector<2x32xf32>
    %22 = vector.extract_strided_slice %15 {offsets = [0, 64], sizes = [2, 32], strides = [1, 1]} : vector<2x128xf32> to vector<2x32xf32>
    %23 = vector.extract_strided_slice %19 {offsets = [0, 96], sizes = [2, 32], strides = [1, 1]} : vector<2x128xf32> to vector<2x32xf32>
    %24 = arith.mulf %21, %11 : vector<2x32xf32>
    %25 = arith.mulf %20, %22 : vector<2x32xf32>
    %26 = arith.addf %24, %25 : vector<2x32xf32>
    %27 = math.tanh %26 : vector<2x32xf32>
    %28 = arith.mulf %23, %27 : vector<2x32xf32>
    %29 = vector.extract_strided_slice %10 {offsets = [2, 0], sizes = [2, 128], strides = [1, 1]} : vector<16x128xf32> to vector<2x128xf32>
    %cst_19 = arith.constant dense<0.000000e+00> : vector<2x128xf32>
    %30 = tpu.matmul %28, %1, %cst_19 {dimension_numbers = #tpu.dot_dimension_numbers<[1], [0], [0], [1], [0, 0, 1, 1], [], []>} : vector<2x32xf32>, vector<32x128xf32>, vector<2x128xf32> -> vector<2x128xf32>
    %31 = arith.addf %29, %30 : vector<2x128xf32>
    %32 = math.tanh %31 : vector<2x128xf32>
    %cst_20 = arith.constant 5.000000e-01 : f32
    %33 = vector.broadcast %cst_20 : f32 to vector<2x128xf32>
    %34 = arith.mulf %33, %32 : vector<2x128xf32>
    %cst_21 = arith.constant 5.000000e-01 : f32
    %35 = vector.broadcast %cst_21 : f32 to vector<2x128xf32>
    %36 = arith.addf %34, %35 : vector<2x128xf32>
    %37 = vector.extract_strided_slice %36 {offsets = [0, 0], sizes = [2, 32], strides = [1, 1]} : vector<2x128xf32> to vector<2x32xf32>
    %38 = vector.extract_strided_slice %36 {offsets = [0, 32], sizes = [2, 32], strides = [1, 1]} : vector<2x128xf32> to vector<2x32xf32>
    %39 = vector.extract_strided_slice %32 {offsets = [0, 64], sizes = [2, 32], strides = [1, 1]} : vector<2x128xf32> to vector<2x32xf32>
    %40 = vector.extract_strided_slice %36 {offsets = [0, 96], sizes = [2, 32], strides = [1, 1]} : vector<2x128xf32> to vector<2x32xf32>
    %41 = arith.mulf %38, %26 : vector<2x32xf32>
    %42 = arith.mulf %37, %39 : vector<2x32xf32>
    %43 = arith.addf %41, %42 : vector<2x32xf32>
    %44 = math.tanh %43 : vector<2x32xf32>
    %45 = arith.mulf %40, %44 : vector<2x32xf32>
    %46 = tpu.concatenate %28, %11 in 1 : vector<2x32xf32>, vector<2x32xf32> -> vector<2x64xf32>
    %cst_22 = arith.constant dense<0.000000e+00> : vector<2x128xf32>
    %47 = tpu.matmul %46, %3, %cst_22 {dimension_numbers = #tpu.dot_dimension_numbers<[1], [0], [0], [1], [0, 0, 1, 1], [], []>} : vector<2x64xf32>, vector<64x128xf32>, vector<2x128xf32> -> vector<2x128xf32>
    %48 = vector.broadcast %4 : vector<1x128xf32> to vector<2x128xf32>
    %49 = arith.addf %47, %48 : vector<2x128xf32>
    %50 = math.tanh %49 : vector<2x128xf32>
    %cst_23 = arith.constant 5.000000e-01 : f32
    %51 = vector.broadcast %cst_23 : f32 to vector<2x128xf32>
    %52 = arith.mulf %51, %50 : vector<2x128xf32>
    %cst_24 = arith.constant 5.000000e-01 : f32
    %53 = vector.broadcast %cst_24 : f32 to vector<2x128xf32>
    %54 = arith.addf %52, %53 : vector<2x128xf32>
    %55 = vector.extract_strided_slice %54 {offsets = [0, 0], sizes = [2, 32], strides = [1, 1]} : vector<2x128xf32> to vector<2x32xf32>
    %56 = vector.extract_strided_slice %54 {offsets = [0, 32], sizes = [2, 32], strides = [1, 1]} : vector<2x128xf32> to vector<2x32xf32>
    %57 = vector.extract_strided_slice %50 {offsets = [0, 64], sizes = [2, 32], strides = [1, 1]} : vector<2x128xf32> to vector<2x32xf32>
    %58 = vector.extract_strided_slice %54 {offsets = [0, 96], sizes = [2, 32], strides = [1, 1]} : vector<2x128xf32> to vector<2x32xf32>
    %59 = arith.mulf %56, %11 : vector<2x32xf32>
    %60 = arith.mulf %55, %57 : vector<2x32xf32>
    %61 = arith.addf %59, %60 : vector<2x32xf32>
    %62 = math.tanh %61 : vector<2x32xf32>
    %63 = arith.mulf %58, %62 : vector<2x32xf32>
    %64 = vector.extract_strided_slice %10 {offsets = [4, 0], sizes = [2, 128], strides = [1, 1]} : vector<16x128xf32> to vector<2x128xf32>
    %cst_25 = arith.constant dense<0.000000e+00> : vector<2x128xf32>
    %65 = tpu.matmul %45, %1, %cst_25 {dimension_numbers = #tpu.dot_dimension_numbers<[1], [0], [0], [1], [0, 0, 1, 1], [], []>} : vector<2x32xf32>, vector<32x128xf32>, vector<2x128xf32> -> vector<2x128xf32>
    %66 = arith.addf %64, %65 : vector<2x128xf32>
    %67 = math.tanh %66 : vector<2x128xf32>
    %cst_26 = arith.constant 5.000000e-01 : f32
    %68 = vector.broadcast %cst_26 : f32 to vector<2x128xf32>
    %69 = arith.mulf %68, %67 : vector<2x128xf32>
    %cst_27 = arith.constant 5.000000e-01 : f32
    %70 = vector.broadcast %cst_27 : f32 to vector<2x128xf32>
    %71 = arith.addf %69, %70 : vector<2x128xf32>
    %72 = vector.extract_strided_slice %71 {offsets = [0, 0], sizes = [2, 32], strides = [1, 1]} : vector<2x128xf32> to vector<2x32xf32>
    %73 = vector.extract_strided_slice %71 {offsets = [0, 32], sizes = [2, 32], strides = [1, 1]} : vector<2x128xf32> to vector<2x32xf32>
    %74 = vector.extract_strided_slice %67 {offsets = [0, 64], sizes = [2, 32], strides = [1, 1]} : vector<2x128xf32> to vector<2x32xf32>
    %75 = vector.extract_strided_slice %71 {offsets = [0, 96], sizes = [2, 32], strides = [1, 1]} : vector<2x128xf32> to vector<2x32xf32>
    %76 = arith.mulf %73, %43 : vector<2x32xf32>
    %77 = arith.mulf %72, %74 : vector<2x32xf32>
    %78 = arith.addf %76, %77 : vector<2x32xf32>
    %79 = math.tanh %78 : vector<2x32xf32>
    %80 = arith.mulf %75, %79 : vector<2x32xf32>
    %81 = tpu.concatenate %45, %63 in 1 : vector<2x32xf32>, vector<2x32xf32> -> vector<2x64xf32>
    %cst_28 = arith.constant dense<0.000000e+00> : vector<2x128xf32>
    %82 = tpu.matmul %81, %3, %cst_28 {dimension_numbers = #tpu.dot_dimension_numbers<[1], [0], [0], [1], [0, 0, 1, 1], [], []>} : vector<2x64xf32>, vector<64x128xf32>, vector<2x128xf32> -> vector<2x128xf32>
    %83 = vector.broadcast %4 : vector<1x128xf32> to vector<2x128xf32>
    %84 = arith.addf %82, %83 : vector<2x128xf32>
    %85 = math.tanh %84 : vector<2x128xf32>
    %cst_29 = arith.constant 5.000000e-01 : f32
    %86 = vector.broadcast %cst_29 : f32 to vector<2x128xf32>
    %87 = arith.mulf %86, %85 : vector<2x128xf32>
    %cst_30 = arith.constant 5.000000e-01 : f32
    %88 = vector.broadcast %cst_30 : f32 to vector<2x128xf32>
    %89 = arith.addf %87, %88 : vector<2x128xf32>
    %90 = vector.extract_strided_slice %89 {offsets = [0, 0], sizes = [2, 32], strides = [1, 1]} : vector<2x128xf32> to vector<2x32xf32>
    %91 = vector.extract_strided_slice %89 {offsets = [0, 32], sizes = [2, 32], strides = [1, 1]} : vector<2x128xf32> to vector<2x32xf32>
    %92 = vector.extract_strided_slice %85 {offsets = [0, 64], sizes = [2, 32], strides = [1, 1]} : vector<2x128xf32> to vector<2x32xf32>
    %93 = vector.extract_strided_slice %89 {offsets = [0, 96], sizes = [2, 32], strides = [1, 1]} : vector<2x128xf32> to vector<2x32xf32>
    %94 = arith.mulf %91, %61 : vector<2x32xf32>
    %95 = arith.mulf %90, %92 : vector<2x32xf32>
    %96 = arith.addf %94, %95 : vector<2x32xf32>
    %97 = math.tanh %96 : vector<2x32xf32>
    %98 = arith.mulf %93, %97 : vector<2x32xf32>
    %99 = vector.extract_strided_slice %10 {offsets = [6, 0], sizes = [2, 128], strides = [1, 1]} : vector<16x128xf32> to vector<2x128xf32>
    %cst_31 = arith.constant dense<0.000000e+00> : vector<2x128xf32>
    %100 = tpu.matmul %80, %1, %cst_31 {dimension_numbers = #tpu.dot_dimension_numbers<[1], [0], [0], [1], [0, 0, 1, 1], [], []>} : vector<2x32xf32>, vector<32x128xf32>, vector<2x128xf32> -> vector<2x128xf32>
    %101 = arith.addf %99, %100 : vector<2x128xf32>
    %102 = math.tanh %101 : vector<2x128xf32>
    %cst_32 = arith.constant 5.000000e-01 : f32
    %103 = vector.broadcast %cst_32 : f32 to vector<2x128xf32>
    %104 = arith.mulf %103, %102 : vector<2x128xf32>
    %cst_33 = arith.constant 5.000000e-01 : f32
    %105 = vector.broadcast %cst_33 : f32 to vector<2x128xf32>
    %106 = arith.addf %104, %105 : vector<2x128xf32>
    %107 = vector.extract_strided_slice %106 {offsets = [0, 0], sizes = [2, 32], strides = [1, 1]} : vector<2x128xf32> to vector<2x32xf32>
    %108 = vector.extract_strided_slice %106 {offsets = [0, 32], sizes = [2, 32], strides = [1, 1]} : vector<2x128xf32> to vector<2x32xf32>
    %109 = vector.extract_strided_slice %102 {offsets = [0, 64], sizes = [2, 32], strides = [1, 1]} : vector<2x128xf32> to vector<2x32xf32>
    %110 = vector.extract_strided_slice %106 {offsets = [0, 96], sizes = [2, 32], strides = [1, 1]} : vector<2x128xf32> to vector<2x32xf32>
    %111 = arith.mulf %108, %78 : vector<2x32xf32>
    %112 = arith.mulf %107, %109 : vector<2x32xf32>
    %113 = arith.addf %111, %112 : vector<2x32xf32>
    %114 = math.tanh %113 : vector<2x32xf32>
    %115 = arith.mulf %110, %114 : vector<2x32xf32>
    %116 = tpu.concatenate %80, %98 in 1 : vector<2x32xf32>, vector<2x32xf32> -> vector<2x64xf32>
    %cst_34 = arith.constant dense<0.000000e+00> : vector<2x128xf32>
    %117 = tpu.matmul %116, %3, %cst_34 {dimension_numbers = #tpu.dot_dimension_numbers<[1], [0], [0], [1], [0, 0, 1, 1], [], []>} : vector<2x64xf32>, vector<64x128xf32>, vector<2x128xf32> -> vector<2x128xf32>
    %118 = vector.broadcast %4 : vector<1x128xf32> to vector<2x128xf32>
    %119 = arith.addf %117, %118 : vector<2x128xf32>
    %120 = math.tanh %119 : vector<2x128xf32>
    %cst_35 = arith.constant 5.000000e-01 : f32
    %121 = vector.broadcast %cst_35 : f32 to vector<2x128xf32>
    %122 = arith.mulf %121, %120 : vector<2x128xf32>
    %cst_36 = arith.constant 5.000000e-01 : f32
    %123 = vector.broadcast %cst_36 : f32 to vector<2x128xf32>
    %124 = arith.addf %122, %123 : vector<2x128xf32>
    %125 = vector.extract_strided_slice %124 {offsets = [0, 0], sizes = [2, 32], strides = [1, 1]} : vector<2x128xf32> to vector<2x32xf32>
    %126 = vector.extract_strided_slice %124 {offsets = [0, 32], sizes = [2, 32], strides = [1, 1]} : vector<2x128xf32> to vector<2x32xf32>
    %127 = vector.extract_strided_slice %120 {offsets = [0, 64], sizes = [2, 32], strides = [1, 1]} : vector<2x128xf32> to vector<2x32xf32>
    %128 = vector.extract_strided_slice %124 {offsets = [0, 96], sizes = [2, 32], strides = [1, 1]} : vector<2x128xf32> to vector<2x32xf32>
    %129 = arith.mulf %126, %96 : vector<2x32xf32>
    %130 = arith.mulf %125, %127 : vector<2x32xf32>
    %131 = arith.addf %129, %130 : vector<2x32xf32>
    %132 = math.tanh %131 : vector<2x32xf32>
    %133 = arith.mulf %128, %132 : vector<2x32xf32>
    %134 = vector.extract_strided_slice %10 {offsets = [8, 0], sizes = [2, 128], strides = [1, 1]} : vector<16x128xf32> to vector<2x128xf32>
    %cst_37 = arith.constant dense<0.000000e+00> : vector<2x128xf32>
    %135 = tpu.matmul %115, %1, %cst_37 {dimension_numbers = #tpu.dot_dimension_numbers<[1], [0], [0], [1], [0, 0, 1, 1], [], []>} : vector<2x32xf32>, vector<32x128xf32>, vector<2x128xf32> -> vector<2x128xf32>
    %136 = arith.addf %134, %135 : vector<2x128xf32>
    %137 = math.tanh %136 : vector<2x128xf32>
    %cst_38 = arith.constant 5.000000e-01 : f32
    %138 = vector.broadcast %cst_38 : f32 to vector<2x128xf32>
    %139 = arith.mulf %138, %137 : vector<2x128xf32>
    %cst_39 = arith.constant 5.000000e-01 : f32
    %140 = vector.broadcast %cst_39 : f32 to vector<2x128xf32>
    %141 = arith.addf %139, %140 : vector<2x128xf32>
    %142 = vector.extract_strided_slice %141 {offsets = [0, 0], sizes = [2, 32], strides = [1, 1]} : vector<2x128xf32> to vector<2x32xf32>
    %143 = vector.extract_strided_slice %141 {offsets = [0, 32], sizes = [2, 32], strides = [1, 1]} : vector<2x128xf32> to vector<2x32xf32>
    %144 = vector.extract_strided_slice %137 {offsets = [0, 64], sizes = [2, 32], strides = [1, 1]} : vector<2x128xf32> to vector<2x32xf32>
    %145 = vector.extract_strided_slice %141 {offsets = [0, 96], sizes = [2, 32], strides = [1, 1]} : vector<2x128xf32> to vector<2x32xf32>
    %146 = arith.mulf %143, %113 : vector<2x32xf32>
    %147 = arith.mulf %142, %144 : vector<2x32xf32>
    %148 = arith.addf %146, %147 : vector<2x32xf32>
    %149 = math.tanh %148 : vector<2x32xf32>
    %150 = arith.mulf %145, %149 : vector<2x32xf32>
    %151 = tpu.concatenate %115, %133 in 1 : vector<2x32xf32>, vector<2x32xf32> -> vector<2x64xf32>
    %cst_40 = arith.constant dense<0.000000e+00> : vector<2x128xf32>
    %152 = tpu.matmul %151, %3, %cst_40 {dimension_numbers = #tpu.dot_dimension_numbers<[1], [0], [0], [1], [0, 0, 1, 1], [], []>} : vector<2x64xf32>, vector<64x128xf32>, vector<2x128xf32> -> vector<2x128xf32>
    %153 = vector.broadcast %4 : vector<1x128xf32> to vector<2x128xf32>
    %154 = arith.addf %152, %153 : vector<2x128xf32>
    %155 = math.tanh %154 : vector<2x128xf32>
    %cst_41 = arith.constant 5.000000e-01 : f32
    %156 = vector.broadcast %cst_41 : f32 to vector<2x128xf32>
    %157 = arith.mulf %156, %155 : vector<2x128xf32>
    %cst_42 = arith.constant 5.000000e-01 : f32
    %158 = vector.broadcast %cst_42 : f32 to vector<2x128xf32>
    %159 = arith.addf %157, %158 : vector<2x128xf32>
    %160 = vector.extract_strided_slice %159 {offsets = [0, 0], sizes = [2, 32], strides = [1, 1]} : vector<2x128xf32> to vector<2x32xf32>
    %161 = vector.extract_strided_slice %159 {offsets = [0, 32], sizes = [2, 32], strides = [1, 1]} : vector<2x128xf32> to vector<2x32xf32>
    %162 = vector.extract_strided_slice %155 {offsets = [0, 64], sizes = [2, 32], strides = [1, 1]} : vector<2x128xf32> to vector<2x32xf32>
    %163 = vector.extract_strided_slice %159 {offsets = [0, 96], sizes = [2, 32], strides = [1, 1]} : vector<2x128xf32> to vector<2x32xf32>
    %164 = arith.mulf %161, %131 : vector<2x32xf32>
    %165 = arith.mulf %160, %162 : vector<2x32xf32>
    %166 = arith.addf %164, %165 : vector<2x32xf32>
    %167 = math.tanh %166 : vector<2x32xf32>
    %168 = arith.mulf %163, %167 : vector<2x32xf32>
    %169 = vector.extract_strided_slice %10 {offsets = [10, 0], sizes = [2, 128], strides = [1, 1]} : vector<16x128xf32> to vector<2x128xf32>
    %cst_43 = arith.constant dense<0.000000e+00> : vector<2x128xf32>
    %170 = tpu.matmul %150, %1, %cst_43 {dimension_numbers = #tpu.dot_dimension_numbers<[1], [0], [0], [1], [0, 0, 1, 1], [], []>} : vector<2x32xf32>, vector<32x128xf32>, vector<2x128xf32> -> vector<2x128xf32>
    %171 = arith.addf %169, %170 : vector<2x128xf32>
    %172 = math.tanh %171 : vector<2x128xf32>
    %cst_44 = arith.constant 5.000000e-01 : f32
    %173 = vector.broadcast %cst_44 : f32 to vector<2x128xf32>
    %174 = arith.mulf %173, %172 : vector<2x128xf32>
    %cst_45 = arith.constant 5.000000e-01 : f32
    %175 = vector.broadcast %cst_45 : f32 to vector<2x128xf32>
    %176 = arith.addf %174, %175 : vector<2x128xf32>
    %177 = vector.extract_strided_slice %176 {offsets = [0, 0], sizes = [2, 32], strides = [1, 1]} : vector<2x128xf32> to vector<2x32xf32>
    %178 = vector.extract_strided_slice %176 {offsets = [0, 32], sizes = [2, 32], strides = [1, 1]} : vector<2x128xf32> to vector<2x32xf32>
    %179 = vector.extract_strided_slice %172 {offsets = [0, 64], sizes = [2, 32], strides = [1, 1]} : vector<2x128xf32> to vector<2x32xf32>
    %180 = vector.extract_strided_slice %176 {offsets = [0, 96], sizes = [2, 32], strides = [1, 1]} : vector<2x128xf32> to vector<2x32xf32>
    %181 = arith.mulf %178, %148 : vector<2x32xf32>
    %182 = arith.mulf %177, %179 : vector<2x32xf32>
    %183 = arith.addf %181, %182 : vector<2x32xf32>
    %184 = math.tanh %183 : vector<2x32xf32>
    %185 = arith.mulf %180, %184 : vector<2x32xf32>
    %186 = tpu.concatenate %150, %168 in 1 : vector<2x32xf32>, vector<2x32xf32> -> vector<2x64xf32>
    %cst_46 = arith.constant dense<0.000000e+00> : vector<2x128xf32>
    %187 = tpu.matmul %186, %3, %cst_46 {dimension_numbers = #tpu.dot_dimension_numbers<[1], [0], [0], [1], [0, 0, 1, 1], [], []>} : vector<2x64xf32>, vector<64x128xf32>, vector<2x128xf32> -> vector<2x128xf32>
    %188 = vector.broadcast %4 : vector<1x128xf32> to vector<2x128xf32>
    %189 = arith.addf %187, %188 : vector<2x128xf32>
    %190 = math.tanh %189 : vector<2x128xf32>
    %cst_47 = arith.constant 5.000000e-01 : f32
    %191 = vector.broadcast %cst_47 : f32 to vector<2x128xf32>
    %192 = arith.mulf %191, %190 : vector<2x128xf32>
    %cst_48 = arith.constant 5.000000e-01 : f32
    %193 = vector.broadcast %cst_48 : f32 to vector<2x128xf32>
    %194 = arith.addf %192, %193 : vector<2x128xf32>
    %195 = vector.extract_strided_slice %194 {offsets = [0, 0], sizes = [2, 32], strides = [1, 1]} : vector<2x128xf32> to vector<2x32xf32>
    %196 = vector.extract_strided_slice %194 {offsets = [0, 32], sizes = [2, 32], strides = [1, 1]} : vector<2x128xf32> to vector<2x32xf32>
    %197 = vector.extract_strided_slice %190 {offsets = [0, 64], sizes = [2, 32], strides = [1, 1]} : vector<2x128xf32> to vector<2x32xf32>
    %198 = vector.extract_strided_slice %194 {offsets = [0, 96], sizes = [2, 32], strides = [1, 1]} : vector<2x128xf32> to vector<2x32xf32>
    %199 = arith.mulf %196, %166 : vector<2x32xf32>
    %200 = arith.mulf %195, %197 : vector<2x32xf32>
    %201 = arith.addf %199, %200 : vector<2x32xf32>
    %202 = math.tanh %201 : vector<2x32xf32>
    %203 = arith.mulf %198, %202 : vector<2x32xf32>
    %204 = vector.extract_strided_slice %10 {offsets = [12, 0], sizes = [2, 128], strides = [1, 1]} : vector<16x128xf32> to vector<2x128xf32>
    %cst_49 = arith.constant dense<0.000000e+00> : vector<2x128xf32>
    %205 = tpu.matmul %185, %1, %cst_49 {dimension_numbers = #tpu.dot_dimension_numbers<[1], [0], [0], [1], [0, 0, 1, 1], [], []>} : vector<2x32xf32>, vector<32x128xf32>, vector<2x128xf32> -> vector<2x128xf32>
    %206 = arith.addf %204, %205 : vector<2x128xf32>
    %207 = math.tanh %206 : vector<2x128xf32>
    %cst_50 = arith.constant 5.000000e-01 : f32
    %208 = vector.broadcast %cst_50 : f32 to vector<2x128xf32>
    %209 = arith.mulf %208, %207 : vector<2x128xf32>
    %cst_51 = arith.constant 5.000000e-01 : f32
    %210 = vector.broadcast %cst_51 : f32 to vector<2x128xf32>
    %211 = arith.addf %209, %210 : vector<2x128xf32>
    %212 = vector.extract_strided_slice %211 {offsets = [0, 0], sizes = [2, 32], strides = [1, 1]} : vector<2x128xf32> to vector<2x32xf32>
    %213 = vector.extract_strided_slice %211 {offsets = [0, 32], sizes = [2, 32], strides = [1, 1]} : vector<2x128xf32> to vector<2x32xf32>
    %214 = vector.extract_strided_slice %207 {offsets = [0, 64], sizes = [2, 32], strides = [1, 1]} : vector<2x128xf32> to vector<2x32xf32>
    %215 = vector.extract_strided_slice %211 {offsets = [0, 96], sizes = [2, 32], strides = [1, 1]} : vector<2x128xf32> to vector<2x32xf32>
    %216 = arith.mulf %213, %183 : vector<2x32xf32>
    %217 = arith.mulf %212, %214 : vector<2x32xf32>
    %218 = arith.addf %216, %217 : vector<2x32xf32>
    %219 = math.tanh %218 : vector<2x32xf32>
    %220 = arith.mulf %215, %219 : vector<2x32xf32>
    %221 = tpu.concatenate %185, %203 in 1 : vector<2x32xf32>, vector<2x32xf32> -> vector<2x64xf32>
    %cst_52 = arith.constant dense<0.000000e+00> : vector<2x128xf32>
    %222 = tpu.matmul %221, %3, %cst_52 {dimension_numbers = #tpu.dot_dimension_numbers<[1], [0], [0], [1], [0, 0, 1, 1], [], []>} : vector<2x64xf32>, vector<64x128xf32>, vector<2x128xf32> -> vector<2x128xf32>
    %223 = vector.broadcast %4 : vector<1x128xf32> to vector<2x128xf32>
    %224 = arith.addf %222, %223 : vector<2x128xf32>
    %225 = math.tanh %224 : vector<2x128xf32>
    %cst_53 = arith.constant 5.000000e-01 : f32
    %226 = vector.broadcast %cst_53 : f32 to vector<2x128xf32>
    %227 = arith.mulf %226, %225 : vector<2x128xf32>
    %cst_54 = arith.constant 5.000000e-01 : f32
    %228 = vector.broadcast %cst_54 : f32 to vector<2x128xf32>
    %229 = arith.addf %227, %228 : vector<2x128xf32>
    %230 = vector.extract_strided_slice %229 {offsets = [0, 0], sizes = [2, 32], strides = [1, 1]} : vector<2x128xf32> to vector<2x32xf32>
    %231 = vector.extract_strided_slice %229 {offsets = [0, 32], sizes = [2, 32], strides = [1, 1]} : vector<2x128xf32> to vector<2x32xf32>
    %232 = vector.extract_strided_slice %225 {offsets = [0, 64], sizes = [2, 32], strides = [1, 1]} : vector<2x128xf32> to vector<2x32xf32>
    %233 = vector.extract_strided_slice %229 {offsets = [0, 96], sizes = [2, 32], strides = [1, 1]} : vector<2x128xf32> to vector<2x32xf32>
    %234 = arith.mulf %231, %201 : vector<2x32xf32>
    %235 = arith.mulf %230, %232 : vector<2x32xf32>
    %236 = arith.addf %234, %235 : vector<2x32xf32>
    %237 = math.tanh %236 : vector<2x32xf32>
    %238 = arith.mulf %233, %237 : vector<2x32xf32>
    %239 = vector.extract_strided_slice %10 {offsets = [14, 0], sizes = [2, 128], strides = [1, 1]} : vector<16x128xf32> to vector<2x128xf32>
    %cst_55 = arith.constant dense<0.000000e+00> : vector<2x128xf32>
    %240 = tpu.matmul %220, %1, %cst_55 {dimension_numbers = #tpu.dot_dimension_numbers<[1], [0], [0], [1], [0, 0, 1, 1], [], []>} : vector<2x32xf32>, vector<32x128xf32>, vector<2x128xf32> -> vector<2x128xf32>
    %241 = arith.addf %239, %240 : vector<2x128xf32>
    %242 = math.tanh %241 : vector<2x128xf32>
    %cst_56 = arith.constant 5.000000e-01 : f32
    %243 = vector.broadcast %cst_56 : f32 to vector<2x128xf32>
    %244 = arith.mulf %243, %242 : vector<2x128xf32>
    %cst_57 = arith.constant 5.000000e-01 : f32
    %245 = vector.broadcast %cst_57 : f32 to vector<2x128xf32>
    %246 = arith.addf %244, %245 : vector<2x128xf32>
    %247 = vector.extract_strided_slice %246 {offsets = [0, 0], sizes = [2, 32], strides = [1, 1]} : vector<2x128xf32> to vector<2x32xf32>
    %248 = vector.extract_strided_slice %246 {offsets = [0, 32], sizes = [2, 32], strides = [1, 1]} : vector<2x128xf32> to vector<2x32xf32>
    %249 = vector.extract_strided_slice %242 {offsets = [0, 64], sizes = [2, 32], strides = [1, 1]} : vector<2x128xf32> to vector<2x32xf32>
    %250 = vector.extract_strided_slice %246 {offsets = [0, 96], sizes = [2, 32], strides = [1, 1]} : vector<2x128xf32> to vector<2x32xf32>
    %251 = arith.mulf %248, %218 : vector<2x32xf32>
    %252 = arith.mulf %247, %249 : vector<2x32xf32>
    %253 = arith.addf %251, %252 : vector<2x32xf32>
    %254 = math.tanh %253 : vector<2x32xf32>
    %255 = arith.mulf %250, %254 : vector<2x32xf32>
    %256 = tpu.concatenate %220, %238 in 1 : vector<2x32xf32>, vector<2x32xf32> -> vector<2x64xf32>
    %cst_58 = arith.constant dense<0.000000e+00> : vector<2x128xf32>
    %257 = tpu.matmul %256, %3, %cst_58 {dimension_numbers = #tpu.dot_dimension_numbers<[1], [0], [0], [1], [0, 0, 1, 1], [], []>} : vector<2x64xf32>, vector<64x128xf32>, vector<2x128xf32> -> vector<2x128xf32>
    %258 = vector.broadcast %4 : vector<1x128xf32> to vector<2x128xf32>
    %259 = arith.addf %257, %258 : vector<2x128xf32>
    %260 = math.tanh %259 : vector<2x128xf32>
    %cst_59 = arith.constant 5.000000e-01 : f32
    %261 = vector.broadcast %cst_59 : f32 to vector<2x128xf32>
    %262 = arith.mulf %261, %260 : vector<2x128xf32>
    %cst_60 = arith.constant 5.000000e-01 : f32
    %263 = vector.broadcast %cst_60 : f32 to vector<2x128xf32>
    %264 = arith.addf %262, %263 : vector<2x128xf32>
    %265 = vector.extract_strided_slice %264 {offsets = [0, 0], sizes = [2, 32], strides = [1, 1]} : vector<2x128xf32> to vector<2x32xf32>
    %266 = vector.extract_strided_slice %264 {offsets = [0, 32], sizes = [2, 32], strides = [1, 1]} : vector<2x128xf32> to vector<2x32xf32>
    %267 = vector.extract_strided_slice %260 {offsets = [0, 64], sizes = [2, 32], strides = [1, 1]} : vector<2x128xf32> to vector<2x32xf32>
    %268 = vector.extract_strided_slice %264 {offsets = [0, 96], sizes = [2, 32], strides = [1, 1]} : vector<2x128xf32> to vector<2x32xf32>
    %269 = arith.mulf %266, %236 : vector<2x32xf32>
    %270 = arith.mulf %265, %267 : vector<2x32xf32>
    %271 = arith.addf %269, %270 : vector<2x32xf32>
    %272 = math.tanh %271 : vector<2x32xf32>
    %273 = arith.mulf %268, %272 : vector<2x32xf32>
    %274 = tpu.concatenate %255, %273 in 1 : vector<2x32xf32>, vector<2x32xf32> -> vector<2x64xf32>
    %cst_61 = arith.constant dense<0.000000e+00> : vector<2x128xf32>
    %275 = tpu.matmul %274, %3, %cst_61 {dimension_numbers = #tpu.dot_dimension_numbers<[1], [0], [0], [1], [0, 0, 1, 1], [], []>} : vector<2x64xf32>, vector<64x128xf32>, vector<2x128xf32> -> vector<2x128xf32>
    %276 = vector.broadcast %4 : vector<1x128xf32> to vector<2x128xf32>
    %277 = arith.addf %275, %276 : vector<2x128xf32>
    %278 = math.tanh %277 : vector<2x128xf32>
    %cst_62 = arith.constant 5.000000e-01 : f32
    %279 = vector.broadcast %cst_62 : f32 to vector<2x128xf32>
    %280 = arith.mulf %279, %278 : vector<2x128xf32>
    %cst_63 = arith.constant 5.000000e-01 : f32
    %281 = vector.broadcast %cst_63 : f32 to vector<2x128xf32>
    %282 = arith.addf %280, %281 : vector<2x128xf32>
    %283 = vector.extract_strided_slice %282 {offsets = [0, 0], sizes = [2, 32], strides = [1, 1]} : vector<2x128xf32> to vector<2x32xf32>
    %284 = vector.extract_strided_slice %282 {offsets = [0, 32], sizes = [2, 32], strides = [1, 1]} : vector<2x128xf32> to vector<2x32xf32>
    %285 = vector.extract_strided_slice %278 {offsets = [0, 64], sizes = [2, 32], strides = [1, 1]} : vector<2x128xf32> to vector<2x32xf32>
    %286 = vector.extract_strided_slice %282 {offsets = [0, 96], sizes = [2, 32], strides = [1, 1]} : vector<2x128xf32> to vector<2x32xf32>
    %287 = arith.mulf %284, %271 : vector<2x32xf32>
    %288 = arith.mulf %283, %285 : vector<2x32xf32>
    %289 = arith.addf %287, %288 : vector<2x32xf32>
    %290 = math.tanh %289 : vector<2x32xf32>
    %291 = arith.mulf %286, %290 : vector<2x32xf32>
    %292 = tpu.concatenate %63, %98, %133, %168, %203, %238, %273, %291 in 0 : vector<2x32xf32>, vector<2x32xf32>, vector<2x32xf32>, vector<2x32xf32>, vector<2x32xf32>, vector<2x32xf32>, vector<2x32xf32>, vector<2x32xf32> -> vector<16x32xf32>
    %cst_64 = arith.constant dense<0.000000e+00> : vector<16x128xf32>
    %293 = tpu.matmul %292, %5, %cst_64 {dimension_numbers = #tpu.dot_dimension_numbers<[1], [0], [0], [1], [0, 0, 1, 1], [], []>} : vector<16x32xf32>, vector<32x128xf32>, vector<16x128xf32> -> vector<16x128xf32>
    %294 = vector.broadcast %6 : vector<1x128xf32> to vector<16x128xf32>
    %295 = arith.addf %293, %294 : vector<16x128xf32>
    %c0_65 = arith.constant 0 : index
    %c0_66 = arith.constant 0 : index
    %296 = vector.load %arg8[%c0_65, %c0_66] : memref<16x128xf32, #tpu.memory_space<vmem>>, vector<16x128xf32>
    tpu.vector_store %arg8[%c0_65, %c0_66], %295 {strides = array<i32>} : memref<16x128xf32, #tpu.memory_space<vmem>>, vector<16x128xf32>,
    return
  }
}

</mosaic_0001>

<bundles_post_ra>
// kernel: tpu_custom_call.1
= control target key start
LH: loop header
LB: loop body
LE: loop exit
PB: predicated region body
PF: predicated region fallthrough
CT: control target
= control target key end

     0   :  { %13 = vsyncpa [#allocation3], 0  ;;  %s3268_s0 = inlined_call_operand.hbm [shape: f32[16,48], index: 0, kind: input, shape index: {}]   ;;  %s3269_s1 = inlined_call_operand.hbm [shape: f32[48,128], index: 1, kind: input, shape index: {}]   ;;  %s3270_s2 = inlined_call_operand.hbm [shape: f32[32,128], index: 2, kind: input, shape index: {}]   ;;  %s3271_s3 = inlined_call_operand.vmem [shape: f32[1,128], index: 3, kind: input, shape index: {}]   ;;  %s3272_s4 = inlined_call_operand.hbm [shape: f32[64,128], index: 4, kind: input, shape index: {}]   ;;  %s3273_s5 = inlined_call_operand.vmem [shape: f32[1,128], index: 5, kind: input, shape index: {}]   ;;  %s3274_s6 = inlined_call_operand.hbm [shape: f32[32,128], index: 6, kind: input, shape index: {}]   ;;  %s3275_s7 = inlined_call_operand.vmem [shape: f32[1,128], index: 7, kind: input, shape index: {}]   ;;  %s3276_s8 = inlined_call_operand.hbm [shape: f32[16,128], index: 8, kind: output, shape index: {}]  }
   0x1   :  { %14 = vsyncpa [#allocation6], 0 }
   0x2   :  { %15 = vsyncpa [#allocation9], 0 }
   0x3   :  { %16 = vsyncpa [#allocation4], 0  ;;  %s2773_s27 = smov [#allocation5]   ;;  %s2774_s29 = smov [#allocation8]  }
   0x4   :  { %s34_s28 = sshll.u32 %s2773_s27, 4  ;;  %s60_s30 = sshll.u32 %s2774_s29, 4  ;;  %s35_s28 = int_to_ptr.vmem [resolvable:$true] %s34_s28  ;;  %s2831_s30 = int_to_ptr.vmem [resolvable:$true] %s60_s30 }
   0x5   :  { %s2633_s11 = scalar_lea.hbm %s3269_s1, 768 }
   0x6   :  { %p2634_p0 = scmp.ne.s32.totalorder %s3269_s1, %s2633_s11  ;;  %p2637_p1 = scmp.lt.u32.totalorder %s2633_s11, %s3269_s1 }
   0x8   :  { %p2639_p2 = pnand %p2637_p1, %p2634_p0 }
   0xa   :  { %2642 = shalt.err (!%p2639_p2)
}
   0xb   :  { %s2643_s16 = scalar_lea.vmem %s35_s28, 768  ;;  %p2648_p4 = scmp.lt.s32.totalorder %s35_s28, %s35_s28 }
   0xc   :  { %p2644_p3 = scmp.ne.s32.totalorder %s35_s28, %s2643_s16  ;;  %p2649_p5 = scmp.lt.s32.totalorder %s2643_s16, %s2643_s16 }
   0xe   :  { %p2650_p6 = por %p2649_p5, %p2648_p4 }
  0x10   :  { %p2651_p7 = pnand %p2650_p6, %p2644_p3 }
  0x12   :  { %2654 = shalt.err (!%p2651_p7)
}
  0x13   :  { %s2775_s17 = smov 128   ;;  %s2776_s18 = smov 8  }
  0x14   :  { %40 = dma.hbm_to_vmem [thread:$0]  %s3269_s1, 768, %s35_s28, [#allocation6], %s2775_s17, %s2775_s17, %s2776_s18  }
  0x15   :  { %s2655_s23 = scalar_lea.hbm %s3272_s4, 1024 }
  0x16   :  { %p2656_p8 = scmp.ne.s32.totalorder %s3272_s4, %s2655_s23  ;;  %p2659_p9 = scmp.lt.u32.totalorder %s2655_s23, %s3272_s4 }
  0x18   :  { %p2661_p10 = pnand %p2659_p9, %p2656_p8 }
  0x1a   :  { %2664 = shalt.err (!%p2661_p10)
}
  0x1b   :  { %s2665_s29 = scalar_lea.vmem %s2831_s30, 1024  ;;  %p2670_p12 = scmp.lt.s32.totalorder %s2831_s30, %s2831_s30 }
  0x1c   :  { %p2666_p11 = scmp.ne.s32.totalorder %s2831_s30, %s2665_s29  ;;  %p2671_p13 = scmp.lt.s32.totalorder %s2665_s29, %s2665_s29 }
  0x1e   :  { %p2672_p0 = por %p2671_p13, %p2670_p12 }
  0x20   :  { %p2673_p1 = pnand %p2672_p0, %p2666_p11 }
  0x22   :  { %2676 = shalt.err (!%p2673_p1)
}
  0x23   :  { %66 = dma.hbm_to_vmem [thread:$0]  %s3272_s4, 1024, %s2831_s30, [#allocation9], %s2775_s17, %s2775_s17, %s2776_s18  }
  0x24   :  { %s2777_s9 = smov [#allocation2]   ;;  %s2778_s11 = smov [#allocation7]  }
  0x25   :  { %s22_s10 = sshll.u32 %s2777_s9, 4  ;;  %s46_s12 = sshll.u32 %s2778_s11, 4  ;;  %s23_s10 = int_to_ptr.vmem [resolvable:$true] %s22_s10  ;;  %s2868_s12 = int_to_ptr.vmem [resolvable:$true] %s46_s12 }
  0x26   :  { %s2677_s15 = scalar_lea.hbm %s3268_s0, 256 }
  0x27   :  { %p2678_p2 = scmp.ne.s32.totalorder %s3268_s0, %s2677_s15  ;;  %p2681_p3 = scmp.lt.u32.totalorder %s2677_s15, %s3268_s0 }
  0x29   :  { %p2683_p4 = pnand %p2681_p3, %p2678_p2 }
  0x2b   :  { %2686 = shalt.err (!%p2683_p4)
}
  0x2c   :  { %s2687_s4 = scalar_lea.vmem %s23_s10, 256  ;;  %p2692_p6 = scmp.lt.s32.totalorder %s23_s10, %s23_s10 }
  0x2d   :  { %p2688_p5 = scmp.ne.s32.totalorder %s23_s10, %s2687_s4  ;;  %p2693_p7 = scmp.lt.s32.totalorder %s2687_s4, %s2687_s4 }
  0x2f   :  { %p2694_p8 = por %p2693_p7, %p2692_p6 }
  0x31   :  { %p2695_p9 = pnand %p2694_p8, %p2688_p5 }
  0x33   :  { %2698 = shalt.err (!%p2695_p9)
}
  0x34   :  { %28 = dma.hbm_to_vmem [thread:$0]  %s3268_s0, 256, %s23_s10, [#allocation3], %s2775_s17, %s2775_s17, %s2776_s18  }
  0x35   :  { %s2699_s25 = scalar_lea.hbm %s3270_s2, 512 }
  0x36   :  { %p2700_p10 = scmp.ne.s32.totalorder %s3270_s2, %s2699_s25  ;;  %p2703_p11 = scmp.lt.u32.totalorder %s2699_s25, %s3270_s2 }
  0x38   :  { %p2705_p12 = pnand %p2703_p11, %p2700_p10 }
  0x3a   :  { %2708 = shalt.err (!%p2705_p12)
}
  0x3b   :  { %s2709_s28 = scalar_lea.vmem %s2868_s12, 512  ;;  %p2714_p0 = scmp.lt.s32.totalorder %s2868_s12, %s2868_s12 }
  0x3c   :  { %p2710_p13 = scmp.ne.s32.totalorder %s2868_s12, %s2709_s28  ;;  %p2715_p1 = scmp.lt.s32.totalorder %s2709_s28, %s2709_s28 }
  0x3e   :  { %p2716_p2 = por %p2715_p1, %p2714_p0 }
  0x40   :  { %p2717_p3 = pnand %p2716_p2, %p2710_p13 }
  0x42   :  { %2720 = shalt.err (!%p2717_p3)
}
  0x43   :  { %52 = dma.hbm_to_vmem [thread:$0]  %s3270_s2, 512, %s2868_s12, [#allocation6], %s2775_s17, %s2775_s17, %s2776_s18  }
  0x44   :  { %s2779_s10 = smov [#allocation10]   ;;  %s2721_s15 = scalar_lea.hbm %s3274_s6, 512 }
  0x45   :  { %s74_s11 = sshll.u32 %s2779_s10, 4  ;;  %p2722_p4 = scmp.ne.s32.totalorder %s3274_s6, %s2721_s15  ;;  %s75_s11 = int_to_ptr.vmem [resolvable:$true] %s74_s11 }
  0x46   :  { %p2725_p5 = scmp.lt.u32.totalorder %s2721_s15, %s3274_s6 }
  0x48   :  { %p2727_p6 = pnand %p2725_p5, %p2722_p4 }
  0x4a   :  { %2730 = shalt.err (!%p2727_p6)
}
  0x4b   :  { %s2731_s4 = scalar_lea.vmem %s75_s11, 512  ;;  %p2736_p8 = scmp.lt.s32.totalorder %s75_s11, %s75_s11 }
  0x4c   :  { %p2732_p7 = scmp.ne.s32.totalorder %s75_s11, %s2731_s4  ;;  %p2737_p9 = scmp.lt.s32.totalorder %s2731_s4, %s2731_s4 }
  0x4e   :  { %p2738_p10 = por %p2737_p9, %p2736_p8 }
  0x50   :  { %p2739_p11 = pnand %p2738_p10, %p2732_p7 }
  0x52   :  { %2742 = shalt.err (!%p2739_p11)
}
  0x53   :  { %80 = dma.hbm_to_vmem [thread:$0]  %s3274_s6, 512, %s75_s11, [#allocation9], %s2775_s17, %s2775_s17, %s2776_s18  }
  0x54   :  { %2765 = dma.done.wait [#allocation3], 256  }
  0x55   :  { %2766 = vsyncadd [#allocation3], 4294967040 }
  0x56   :  { %2767 = dma.done.wait [#allocation6], 1280  }
  0x57   :  { %2768 = vsyncadd [#allocation6], 4294966016 }
  0x58   :  { %2769 = dma.done.wait [#allocation9], 1536  }
  0x59   :  { %2770 = vsyncadd [#allocation9], 4294965760  ;;  %v2780_v0 = vmov 0.0|0.0   ;;  %vm2781_vm0 = vmmov 0   ;;  %v2782_v1 = vmov 0.0   ;;  %v98_v2 = vld [vmem:[#allocation5] sm:$0xff] }
  0x5a   :  { %2404 = vmatprep.subr.bf16.mxu1 %v2780_v0  ;;  %2149 = vmatprep.mubr.msk.f32.mxu1 %vm2781_vm0, %v2782_v1  ;;  %v99_v3 = vld [vmem:[#allocation5 + $0x8] sm:$0xff]  ;;  %v100_v4 = vld [vmem:[#allocation5 + $0x10] sm:$0xff]  ;;  %vm131_vm1 = vcmask 392192   ;;  %v101_v6 = vld [vmem:[#allocation5 + $0x18] sm:$0xff]  ;;  %s2783_s22 = smov 64   ;;  %s2784_s23 = smov 32  }
  0x5b   :  { %v2392_v5 = vpack.c.bf16 %v99_v3, %v98_v2  ;;  %v104_v7 = vld [vmem:[#allocation7] sm:$0xff]  ;;  %v105_v8 = vld [vmem:[#allocation7 + $0x8] sm:$0xff]  ;;  %v2396_v9 = vpack.c.bf16 %v101_v6, %v100_v4  ;;  %v102_v11 = vld [vmem:[#allocation5 + $0x20] sm:$0xff]  ;;  %vm213_vm2 = vcmask 261120   ;;  %vm418_vm3 = vcmask 523264   ;;  %s2785_s26 = smov [#allocation11]  }
  0x5c   :  { %v2923_v10 = vpack.c.bf16 %v105_v8, %v104_v7  ;;  %v103_v12 = vld [vmem:[#allocation5 + $0x28] sm:$0xff]  ;;  %v123_v13 = vld [vmem:[#allocation2] sm:$0xff]  ;;  %v106_v14 = vld [vmem:[#allocation7 + $0x10] sm:$0xff]  ;;  %vm1857_vm4 = vcmask 1041408   ;;  %vm1859_vm5 = vcmask 1043456   ;;  %vm1861_vm6 = vcmask 1045504  }
  0x5d   :  { %2393 = vmatprep.subr.bf16.mxu0 %v2392_v5  ;;  %2138 = vmatprep.mubr.msk.f32.mxu0 %vm131_vm1, %v123_v13  ;;  %v107_v15 = vld [vmem:[#allocation7 + $0x18] sm:$0xff]  ;;  %v2400_v17 = vpack.c.bf16 %v103_v12, %v102_v11  ;;  %v124_v18 = vld [vmem:[#allocation2 + $0x8] sm:$0xff]  ;;  %v1978_v21 = vld [vmem:[%s3271_s3] ss:$0 sm:$0xff]  ;;  %s1964_s27 = sshll.u32 %s2785_s26, 4  ;;  %s1965_s27 = int_to_ptr.vmem [resolvable:$true] %s1964_s27 }
  0x5e   :  { %2395 = vmatpush3.bf16.msra.mxu0 %v2392_v5  ;;  %2406 = vmatpush3.bf16.msra.mxu1 %v2923_v10  ;;  %v2927_v16 = vpack.c.bf16 %v107_v15, %v106_v14  ;;  %v109_v35 = vld [vmem:[#allocation8] sm:$0xff]  ;;  %v110_v36 = vld [vmem:[#allocation8 + $0x8] sm:$0xff]  ;;  %v111_v37 = vld [vmem:[#allocation8 + $0x10] sm:$0xff]  ;;  %s2743_s29 = scalar_lea.vmem %s1965_s27, 256  ;;  %p2748_p13 = scmp.lt.s32.totalorder %s1965_s27, %s1965_s27 }
  0x5f   :  { %2397 = vmatprep.subr.bf16.mxu0 %v2396_v9  ;;  %2407 = vmatprep.subr.bf16.mxu1 %v2780_v0  ;;  %v2956_v38 = vpack.c.bf16 %v110_v36, %v109_v35  ;;  %v112_v39 = vld [vmem:[#allocation8 + $0x18] sm:$0xff]  ;;  %v113_v41 = vld [vmem:[#allocation8 + $0x20] sm:$0xff]  ;;  %v114_v42 = vld [vmem:[#allocation8 + $0x28] sm:$0xff]  ;;  %p2744_p12 = scmp.ne.s32.totalorder %s1965_s27, %s2743_s29  ;;  %p2749_p0 = scmp.lt.s32.totalorder %s2743_s29, %s2743_s29 }
  0x60   :  { %v2959_v40 = vpack.c.bf16 %v112_v39, %v111_v37  ;;  %v2963_v43 = vpack.c.bf16 %v114_v42, %v113_v41  ;;  %v115_v44 = vld [vmem:[#allocation8 + $0x30] sm:$0xff]  ;;  %v116_v45 = vld [vmem:[#allocation8 + $0x38] sm:$0xff]  ;;  %v2992_v52 = vld [vmem:[%s3273_s5] ss:$0 sm:$0xff] }
  0x61   :  { %v2968_v47 = vpack.c.bf16 %v116_v45, %v115_v44  ;;  %p2750_p1 = por %p2749_p0, %p2748_p13 }
  0x62   :  { %2399 = vmatpush3.bf16.msra.mxu0 %v2396_v9  ;;  %2409 = vmatpush3.bf16.msra.mxu1 %v2927_v16 }
  0x63   :  { %2401 = vmatprep.subr.bf16.mxu0 %v2400_v17  ;;  %2410 = vmatprep.subr.bf16.mxu1 %v2780_v0  ;;  %p2751_p2 = pnand %p2750_p1, %p2744_p12 }
  0x65   :  { %2150 = vmatmul.mubr.f32.vlgmr.msra.gmra.mrb[0].mxu1 %v2782_v1 }
  0x66   :  { %2403 = vmatpush3.bf16.msra.mxu0 %v2400_v17  ;;  %2412 = vmatpush3.bf16.msra.mxu1 %v2923_v10 }
  0x67   :  { %2416 = vmatprep.subr.bf16.mxu0 %v2780_v0  ;;  %2413 = vmatprep.subr.bf16.mxu1 %v2780_v0 }
  0x68   :  { %2160 = vmatprep.mubr.msk.f32.mxu1 %vm2781_vm0, %v2782_v1 }
  0x69   :  { %2139 = vmatmul.mubr.msk.f32.vlgmr.msra.gmra.mrb[0].mxu0 %vm131_vm1, %v124_v18 }
  0x6a   :  { %2415 = vmatpush3.bf16.msra.mxu1 %v2927_v16  ;;  %2179 = vmatprep.mubr.msk.f32.mxu0 %vm2781_vm0, %v2782_v1 }
  0x6b   :  { %2428 = vmatprep.subr.bf16.mxu1 %v2780_v0  ;;  %2418 = vmatpush3.bf16.msra.mxu0 %v2956_v38 }
  0x6c   :  { %2419 = vmatprep.subr.bf16.mxu0 %v2780_v0 }
  0x6f   :  { %2421 = vmatpush3.bf16.msra.mxu0 %v2959_v40 }
  0x70   :  { %2422 = vmatprep.subr.bf16.mxu0 %v2780_v0 }
  0x73   :  { %2424 = vmatpush3.bf16.msra.mxu0 %v2963_v43 }
  0x74   :  { %2425 = vmatprep.subr.bf16.mxu0 %v2780_v0 }
  0x77   :  { %2427 = vmatpush3.bf16.msra.mxu0 %v2968_v47 }
  0x78   :  { %2446 = vmatprep.subr.bf16.mxu0 %v2780_v0 }
 0x138   :  { %v283_v19 = vpop.f32.mrb[0].mxu1 }
 0x139   :  { %v2151_v20 = vpop.f32.mrb[1].mxu1 }
 0x13c   :  { %v2140_v22 = vpop.f32.mrb[0].mxu0 }
 0x13d   :  { %v2946_v23 = vadd.f32 %v2140_v22, %v1978_v21  ;;  %v204_v24 = vpop.f32.mrb[1].mxu0 }
 0x13e   :  { %v2948_v25 = vadd.f32 %v1978_v21, %v204_v24 }
 0x140   :  { %v287_v26 = vadd.f32 %v283_v19, %v2948_v25 }
 0x142   :  { %2569 = vtanh.f32 %v287_v26 }
 0x14c   :  { %v2570_v27 = vpop.eup %2569 }
 0x14d   :  { %293 = vrot.lane.b32.xlu0 %v2570_v27, %s2783_s22  ;;  %v289_v28 = vmul.f32 0.5, %v2570_v27 }
 0x14f   :  { %v290_v29 = vadd.f32 0.5, %v289_v28 }
 0x151   :  { %v291_v32 = vmul.f32 0.0, %v290_v29 }
 0x1bf   :  { %v294_v30 = vpop.permute.xlu0 %293 }
 0x1c0   :  { %v296_v31 = vmul.f32 %v294_v30, %v290_v29 }
 0x1c2   :  { %298 = vrot.lane.b32.xlu0 %v296_v31, %s2784_s23 }
 0x234   :  { %v299_v33 = vpop.permute.xlu0 %298 }
 0x235   :  { %v2953_v34 = vadd.f32 %v299_v33, %v291_v32 }
 0x237   :  { %2571 = vtanh.f32 %v2953_v34  ;;  %v391_v8 = vrot.slane %v2953_v34, 6 }
 0x241   :  { %v2572_v46 = vpop.eup %2571 }
 0x242   :  { %304 = vrot.lane.b32.xlu1 %v2572_v46, %s2783_s22 }
 0x2b4   :  { %v305_v48 = vpop.permute.xlu1 %304 }
 0x2b5   :  { %v307_v49 = vmul.f32 %v305_v48, %v290_v29 }
 0x2b7   :  { %309 = vrot.lane.b32.xlu1 %v307_v49, %s2784_s23 }
 0x329   :  { %v310_v50 = vpop.permute.xlu1 %309 }
 0x32a   :  { %v411_v51 = vsel %vm213_vm2, %v310_v50, 0.0  ;;  %2161 = vmatmul.mubr.msk.f32.vlgmr.msra.gmra.mrb[2].mxu1 %vm213_vm2, %v310_v50 }
 0x32b   :  { %2180 = vmatmul.mubr.msk.f32.vlgmr.msra.gmra.mrb[2].mxu0 %vm418_vm3, %v411_v51  ;;  %2430 = vmatpush3.bf16.msra.mxu1 %v2923_v10 }
 0x32c   :  { %2431 = vmatprep.subr.bf16.mxu1 %v2780_v0  ;;  %2190 = vmatprep.mubr.msk.f32.mxu1 %vm2781_vm0, %v2782_v1 }
 0x32d   :  { %2448 = vmatpush3.bf16.msra.mxu0 %v2923_v10  ;;  %2220 = vmatprep.mubr.msk.f32.mxu0 %vm2781_vm0, %v2782_v1 }
 0x32e   :  { %2449 = vmatprep.subr.bf16.mxu0 %v2780_v0 }
 0x32f   :  { %2433 = vmatpush3.bf16.msra.mxu1 %v2927_v16 }
 0x330   :  { %2434 = vmatprep.subr.bf16.mxu1 %v2780_v0 }
 0x331   :  { %2451 = vmatpush3.bf16.msra.mxu0 %v2927_v16 }
 0x332   :  { %2452 = vmatprep.subr.bf16.mxu0 %v2780_v0 }
 0x3fd   :  { %v379_v53 = vpop.f32.mrb[2].mxu1 }
 0x3fe   :  { %v384_v54 = vrot.slane %v379_v53, 6  ;;  %v2162_v55 = vpop.f32.mrb[3].mxu1  ;;  %v488_v56 = vpop.f32.mrb[2].mxu0 }
 0x3ff   :  { %v489_v57 = vadd.f32 %v2992_v52, %v488_v56  ;;  %v2181_v58 = vpop.f32.mrb[3].mxu0 }
 0x400   :  { %v386_v59 = vadd.f32 %v384_v54, %v2948_v25 }
 0x401   :  { %2573 = vtanh.f32 %v489_v57 }
 0x402   :  { %2575 = vtanh.f32 %v386_v59 }
 0x40b   :  { %v2574_v60 = vpop.eup %2573 }
 0x40c   :  { %v2576_v61 = vpop.eup %2575  ;;  %497 = vrot.lane.b32.xlu1 %v2574_v60, %s2783_s22  ;;  %v493_v62 = vmul.f32 0.5, %v2574_v60 }
 0x40d   :  { %395 = vrot.lane.b32.xlu0 %v2576_v61, %s2783_s22  ;;  %v388_v63 = vmul.f32 0.5, %v2576_v61 }
 0x40e   :  { %v494_v2 = vadd.f32 0.5, %v493_v62 }
 0x40f   :  { %v389_v4 = vadd.f32 0.5, %v388_v63 }
 0x410   :  { %v495_v9 = vmul.f32 0.0, %v494_v2 }
 0x411   :  { %v393_v12 = vmul.f32 %v391_v8, %v389_v4 }
 0x47e   :  { %v498_v3 = vpop.permute.xlu1 %497 }
 0x47f   :  { %v500_v5 = vmul.f32 %v498_v3, %v494_v2  ;;  %v396_v6 = vpop.permute.xlu0 %395 }
 0x480   :  { %v398_v7 = vmul.f32 %v396_v6, %v389_v4 }
 0x481   :  { %502 = vrot.lane.b32.xlu1 %v500_v5, %s2784_s23 }
 0x482   :  { %400 = vrot.lane.b32.xlu0 %v398_v7, %s2784_s23 }
 0x4f3   :  { %v503_v11 = vpop.permute.xlu1 %502 }
 0x4f4   :  { %v3001_v13 = vadd.f32 %v503_v11, %v495_v9  ;;  %v401_v14 = vpop.permute.xlu0 %400 }
 0x4f5   :  { %v403_v15 = vadd.f32 %v401_v14, %v393_v12 }
 0x4f6   :  { %2577 = vtanh.f32 %v3001_v13 }
 0x4f7   :  { %2579 = vtanh.f32 %v403_v15  ;;  %v596_v54 = vrot.slane %v403_v15, 6 }
 0x500   :  { %v2578_v17 = vpop.eup %2577 }
 0x501   :  { %v2580_v18 = vpop.eup %2579  ;;  %508 = vrot.lane.b32.xlu1 %v2578_v17, %s2783_s22 }
 0x502   :  { %406 = vrot.lane.b32.xlu0 %v2580_v18, %s2783_s22 }
 0x573   :  { %v509_v19 = vpop.permute.xlu1 %508 }
 0x574   :  { %v407_v20 = vpop.permute.xlu0 %406  ;;  %v3006_v22 = vmul.f32 %v509_v19, %v494_v2 }
 0x575   :  { %v409_v21 = vmul.f32 %v407_v20, %v389_v4 }
 0x576   :  { %v619_v26 = vrot.slane %v3006_v22, 6 }
 0x577   :  { %v513_v24 = vrot.slane %v409_v21, 2  ;;  %615 = vrot.lane.b32.xlu1 %v409_v21, %s2784_s23 }
 0x579   :  { %514 = vrot.lane.b32.xlu0 %v513_v24, %s2784_s23 }
 0x57d   :  { %620 = vrot.lane.b32.xlu0 %v619_v26, %s2783_s22 }
 0x5e9   :  { %v616_v29 = vpop.permute.xlu1 %615 }
 0x5eb   :  { %v515_v27 = vpop.permute.xlu0 %514 }
 0x5ec   :  { %2191 = vmatmul.mubr.msk.f32.vlgmr.msra.gmra.mrb[4].mxu1 %vm213_vm2, %v515_v27 }
 0x5ed   :  { %2436 = vmatpush3.bf16.msra.mxu1 %v2956_v38  ;;  %2209 = vmatprep.mubr.msk.f32.mxu1 %vm2781_vm0, %v2782_v1 }
 0x5ee   :  { %2437 = vmatprep.subr.bf16.mxu1 %v2780_v0 }
 0x5ef   :  { %v621_v28 = vpop.permute.xlu0 %620 }
 0x5f0   :  { %v623_v30 = vsel %vm213_vm2, %v616_v29, %v621_v28 }
 0x5f1   :  { %2439 = vmatpush3.bf16.msra.mxu1 %v2959_v40  ;;  %v625_v31 = vrot.slane %v623_v30, 2 }
 0x5f2   :  { %2440 = vmatprep.subr.bf16.mxu1 %v2780_v0 }
 0x5f5   :  { %2442 = vmatpush3.bf16.msra.mxu1 %v2963_v43 }
 0x5f6   :  { %2443 = vmatprep.subr.bf16.mxu1 %v2780_v0 }
 0x5f9   :  { %2445 = vmatpush3.bf16.msra.mxu1 %v2968_v47 }
 0x5fa   :  { %2464 = vmatprep.subr.bf16.mxu1 %v2780_v0 }
 0x5fc   :  { %2210 = vmatmul.mubr.msk.f32.vlgmr.msra.gmra.mrb[6].mxu1 %vm418_vm3, %v625_v31 }
 0x5fd   :  { %2466 = vmatpush3.bf16.msra.mxu1 %v2923_v10  ;;  %2250 = vmatprep.mubr.msk.f32.mxu1 %vm2781_vm0, %v2782_v1 }
 0x5fe   :  { %2467 = vmatprep.subr.bf16.mxu1 %v2780_v0 }
 0x601   :  { %2469 = vmatpush3.bf16.msra.mxu1 %v2927_v16 }
 0x602   :  { %2470 = vmatprep.subr.bf16.mxu1 %v2780_v0 }
 0x6bf   :  { %v584_v32 = vpop.f32.mrb[4].mxu1 }
 0x6c0   :  { %v589_v33 = vrot.slane %v584_v32, 4  ;;  %v2192_v34 = vpop.f32.mrb[5].mxu1 }
 0x6c2   :  { %v591_v35 = vadd.f32 %v589_v33, %v2948_v25 }
 0x6c4   :  { %2581 = vtanh.f32 %v591_v35 }
 0x6ce   :  { %v2582_v36 = vpop.eup %2581 }
 0x6cf   :  { %v694_v37 = vpop.f32.mrb[6].mxu1  ;;  %600 = vrot.lane.b32.xlu1 %v2582_v36, %s2783_s22  ;;  %v593_v44 = vmul.f32 0.5, %v2582_v36 }
 0x6d0   :  { %v695_v39 = vadd.f32 %v2992_v52, %v694_v37  ;;  %v2211_v41 = vpop.f32.mrb[7].mxu1 }
 0x6d1   :  { %v594_v45 = vadd.f32 0.5, %v593_v44 }
 0x6d2   :  { %2583 = vtanh.f32 %v695_v39 }
 0x6d3   :  { %v598_v55 = vmul.f32 %v596_v54, %v594_v45 }
 0x6dc   :  { %v2584_v42 = vpop.eup %2583 }
 0x6dd   :  { %703 = vrot.lane.b32.xlu0 %v2584_v42, %s2783_s22  ;;  %v699_v49 = vmul.f32 0.5, %v2584_v42 }
 0x6df   :  { %v700_v50 = vadd.f32 0.5, %v699_v49 }
 0x6e1   :  { %v701_v59 = vmul.f32 %v700_v50, %v3001_v13 }
 0x741   :  { %v601_v46 = vpop.permute.xlu1 %600 }
 0x742   :  { %v603_v48 = vmul.f32 %v601_v46, %v594_v45 }
 0x744   :  { %605 = vrot.lane.b32.xlu1 %v603_v48, %s2784_s23 }
 0x74f   :  { %v704_v51 = vpop.permute.xlu0 %703 }
 0x750   :  { %v706_v53 = vmul.f32 %v704_v51, %v700_v50 }
 0x752   :  { %708 = vrot.lane.b32.xlu0 %v706_v53, %s2784_s23 }
 0x7b6   :  { %v606_v56 = vpop.permute.xlu1 %605 }
 0x7b7   :  { %v3037_v57 = vadd.f32 %v606_v56, %v598_v55 }
 0x7b9   :  { %2585 = vtanh.f32 %v3037_v57  ;;  %v802_v33 = vrot.slane %v3037_v57, 6 }
 0x7c3   :  { %v2586_v58 = vpop.eup %2585 }
 0x7c4   :  { %v709_v60 = vpop.permute.xlu0 %708  ;;  %611 = vrot.lane.b32.xlu1 %v2586_v58, %s2783_s22 }
 0x7c5   :  { %v3042_v61 = vadd.f32 %v709_v60, %v701_v59 }
 0x7c7   :  { %2587 = vtanh.f32 %v3042_v61 }
 0x7d1   :  { %v2588_v62 = vpop.eup %2587 }
 0x7d2   :  { %714 = vrot.lane.b32.xlu0 %v2588_v62, %s2783_s22 }
 0x836   :  { %v612_v63 = vpop.permute.xlu1 %611 }
 0x837   :  { %v614_v2 = vmul.f32 %v612_v63, %v594_v45 }
 0x839   :  { %v719_v3 = vrot.slane %v614_v2, 4  ;;  %821 = vrot.lane.b32.xlu0 %v614_v2, %s2784_s23 }
 0x83b   :  { %720 = vrot.lane.b32.xlu1 %v719_v3, %s2784_s23 }
 0x844   :  { %v715_v4 = vpop.permute.xlu0 %714 }
 0x845   :  { %v3048_v5 = vmul.f32 %v715_v4, %v700_v50 }
 0x847   :  { %v825_v6 = vrot.slane %v3048_v5, 4  ;;  %v1844_v49 = vrot.slane %v3048_v5, 6 }
 0x849   :  { %826 = vrot.lane.b32.xlu1 %v825_v6, %s2783_s22  ;;  %v1858_v55 = vsel %vm1857_vm4, %v3006_v22, %v1844_v49 }
 0x8ab   :  { %v822_v8 = vpop.permute.xlu0 %821 }
 0x8ad   :  { %v721_v7 = vpop.permute.xlu1 %720 }
 0x8ae   :  { %2221 = vmatmul.mubr.msk.f32.vlgmr.msra.gmra.mrb[4].mxu0 %vm213_vm2, %v721_v7 }
 0x8af   :  { %2454 = vmatpush3.bf16.msra.mxu0 %v2956_v38  ;;  %2239 = vmatprep.mubr.msk.f32.mxu0 %vm2781_vm0, %v2782_v1 }
 0x8b0   :  { %2455 = vmatprep.subr.bf16.mxu0 %v2780_v0 }
 0x8b3   :  { %2457 = vmatpush3.bf16.msra.mxu0 %v2959_v40 }
 0x8b4   :  { %2458 = vmatprep.subr.bf16.mxu0 %v2780_v0 }
 0x8b7   :  { %2460 = vmatpush3.bf16.msra.mxu0 %v2963_v43 }
 0x8b8   :  { %2461 = vmatprep.subr.bf16.mxu0 %v2780_v0 }
 0x8bb   :  { %v827_v9 = vpop.permute.xlu1 %826  ;;  %2463 = vmatpush3.bf16.msra.mxu0 %v2968_v47 }
 0x8bc   :  { %v829_v11 = vsel %vm213_vm2, %v822_v8, %v827_v9  ;;  %2482 = vmatprep.subr.bf16.mxu0 %v2780_v0 }
 0x8bd   :  { %v831_v12 = vrot.slane %v829_v11, 4 }
 0x8bf   :  { %2240 = vmatmul.mubr.msk.f32.vlgmr.msra.gmra.mrb[6].mxu0 %vm418_vm3, %v831_v12 }
 0x8c0   :  { %2484 = vmatpush3.bf16.msra.mxu0 %v2923_v10  ;;  %2280 = vmatprep.mubr.msk.f32.mxu0 %vm2781_vm0, %v2782_v1 }
 0x8c1   :  { %2485 = vmatprep.subr.bf16.mxu0 %v2780_v0 }
 0x8c4   :  { %2487 = vmatpush3.bf16.msra.mxu0 %v2927_v16 }
 0x8c5   :  { %2488 = vmatprep.subr.bf16.mxu0 %v2780_v0 }
 0x981   :  { %v790_v13 = vpop.f32.mrb[4].mxu0 }
 0x982   :  { %v795_v14 = vrot.slane %v790_v13, 2  ;;  %v2222_v15 = vpop.f32.mrb[5].mxu0 }
 0x984   :  { %v797_v17 = vadd.f32 %v795_v14, %v2948_v25 }
 0x986   :  { %2589 = vtanh.f32 %v797_v17 }
 0x990   :  { %v2590_v18 = vpop.eup %2589 }
 0x991   :  { %806 = vrot.lane.b32.xlu0 %v2590_v18, %s2783_s22  ;;  %v799_v26 = vmul.f32 0.5, %v2590_v18 }
 0x992   :  { %v900_v19 = vpop.f32.mrb[6].mxu0 }
 0x993   :  { %v901_v20 = vadd.f32 %v2992_v52, %v900_v19  ;;  %v2241_v21 = vpop.f32.mrb[7].mxu0  ;;  %v800_v27 = vadd.f32 0.5, %v799_v26 }
 0x995   :  { %2591 = vtanh.f32 %v901_v20  ;;  %v804_v34 = vmul.f32 %v802_v33, %v800_v27 }
 0x99f   :  { %v2592_v24 = vpop.eup %2591 }
 0x9a0   :  { %909 = vrot.lane.b32.xlu1 %v2592_v24, %s2783_s22  ;;  %v905_v30 = vmul.f32 0.5, %v2592_v24 }
 0x9a2   :  { %v906_v25 = vadd.f32 0.5, %v905_v30 }
 0x9a4   :  { %v907_v39 = vmul.f32 %v906_v25, %v3042_v61 }
 0xa03   :  { %v807_v28 = vpop.permute.xlu0 %806 }
 0xa04   :  { %v809_v29 = vmul.f32 %v807_v28, %v800_v27 }
 0xa06   :  { %811 = vrot.lane.b32.xlu0 %v809_v29, %s2784_s23 }
 0xa12   :  { %v910_v31 = vpop.permute.xlu1 %909 }
 0xa13   :  { %v912_v32 = vmul.f32 %v910_v31, %v906_v25 }
 0xa15   :  { %914 = vrot.lane.b32.xlu1 %v912_v32, %s2784_s23 }
 0xa78   :  { %v812_v35 = vpop.permute.xlu0 %811 }
 0xa79   :  { %v3078_v36 = vadd.f32 %v812_v35, %v804_v34 }
 0xa7b   :  { %2593 = vtanh.f32 %v3078_v36  ;;  %v1005_v17 = vrot.slane %v3078_v36, 6 }
 0xa85   :  { %v2594_v37 = vpop.eup %2593 }
 0xa86   :  { %817 = vrot.lane.b32.xlu0 %v2594_v37, %s2783_s22 }
 0xa87   :  { %v915_v41 = vpop.permute.xlu1 %914 }
 0xa88   :  { %v3083_v42 = vadd.f32 %v915_v41, %v907_v39 }
 0xa8a   :  { %2595 = vtanh.f32 %v3083_v42 }
 0xa94   :  { %v2596_v44 = vpop.eup %2595 }
 0xa95   :  { %920 = vrot.lane.b32.xlu1 %v2596_v44, %s2783_s22 }
 0xaf8   :  { %v818_v45 = vpop.permute.xlu0 %817 }
 0xaf9   :  { %v820_v46 = vmul.f32 %v818_v45, %v800_v27 }
 0xafb   :  { %v925_v48 = vrot.slane %v820_v46, 6  ;;  %1024 = vrot.lane.b32.xlu1 %v820_v46, %s2784_s23 }
 0xafd   :  { %926 = vrot.lane.b32.xlu0 %v925_v48, %s2784_s23 }
 0xb07   :  { %v921_v50 = vpop.permute.xlu1 %920 }
 0xb08   :  { %v923_v51 = vmul.f32 %v921_v50, %v906_v25 }
 0xb0a   :  { %v1028_v53 = vrot.slane %v923_v51, 2  ;;  %v1846_v54 = vrot.slane %v923_v51, 4 }
 0xb0c   :  { %1029 = vrot.lane.b32.xlu0 %v1028_v53, %s2783_s22  ;;  %v3094_v56 = vsel %vm1859_vm5, %v1858_v55, %v1846_v54 }
 0xb6d   :  { %v1025_v22 = vpop.permute.xlu1 %1024 }
 0xb6f   :  { %v927_v57 = vpop.permute.xlu0 %926 }
 0xb70   :  { %2251 = vmatmul.mubr.msk.f32.vlgmr.msra.gmra.mrb[8].mxu1 %vm213_vm2, %v927_v57 }
 0xb71   :  { %2472 = vmatpush3.bf16.msra.mxu1 %v2956_v38  ;;  %2269 = vmatprep.mubr.msk.f32.mxu1 %vm2781_vm0, %v2782_v1 }
 0xb72   :  { %2473 = vmatprep.subr.bf16.mxu1 %v2780_v0 }
 0xb75   :  { %2475 = vmatpush3.bf16.msra.mxu1 %v2959_v40 }
 0xb76   :  { %2476 = vmatprep.subr.bf16.mxu1 %v2780_v0 }
 0xb79   :  { %2478 = vmatpush3.bf16.msra.mxu1 %v2963_v43 }
 0xb7a   :  { %2479 = vmatprep.subr.bf16.mxu1 %v2780_v0 }
 0xb7d   :  { %2481 = vmatpush3.bf16.msra.mxu1 %v2968_v47 }
 0xb7e   :  { %v1030_v58 = vpop.permute.xlu0 %1029  ;;  %2500 = vmatprep.subr.bf16.mxu1 %v2780_v0 }
 0xb7f   :  { %v1032_v59 = vsel %vm213_vm2, %v1025_v22, %v1030_v58 }
 0xb80   :  { %v1034_v60 = vrot.slane %v1032_v59, 6 }
 0xb82   :  { %2270 = vmatmul.mubr.msk.f32.vlgmr.msra.gmra.mrb[10].mxu1 %vm418_vm3, %v1034_v60 }
 0xb83   :  { %2502 = vmatpush3.bf16.msra.mxu1 %v2923_v10  ;;  %2310 = vmatprep.mubr.msk.f32.mxu1 %vm2781_vm0, %v2782_v1 }
 0xb84   :  { %2503 = vmatprep.subr.bf16.mxu1 %v2780_v0 }
 0xb87   :  { %2505 = vmatpush3.bf16.msra.mxu1 %v2927_v16 }
 0xb88   :  { %2506 = vmatprep.subr.bf16.mxu1 %v2780_v0 }
 0xc43   :  { %v996_v61 = vpop.f32.mrb[8].mxu1 }
 0xc44   :  { %v1000_v62 = vadd.f32 %v996_v61, %v2946_v23  ;;  %v2252_v63 = vpop.f32.mrb[9].mxu1 }
 0xc46   :  { %2597 = vtanh.f32 %v1000_v62 }
 0xc50   :  { %v2598_v2 = vpop.eup %2597 }
 0xc51   :  { %1009 = vrot.lane.b32.xlu1 %v2598_v2, %s2783_s22  ;;  %v1002_v7 = vmul.f32 0.5, %v2598_v2 }
 0xc53   :  { %v1003_v8 = vadd.f32 0.5, %v1002_v7 }
 0xc55   :  { %v1103_v3 = vpop.f32.mrb[10].mxu1  ;;  %v1007_v18 = vmul.f32 %v1005_v17, %v1003_v8 }
 0xc56   :  { %v1104_v4 = vadd.f32 %v2992_v52, %v1103_v3  ;;  %v2271_v5 = vpop.f32.mrb[11].mxu1 }
 0xc58   :  { %2599 = vtanh.f32 %v1104_v4 }
 0xc62   :  { %v2600_v6 = vpop.eup %2599 }
 0xc63   :  { %1112 = vrot.lane.b32.xlu0 %v2600_v6, %s2783_s22  ;;  %v1108_v12 = vmul.f32 0.5, %v2600_v6 }
 0xc65   :  { %v1109_v13 = vadd.f32 0.5, %v1108_v12 }
 0xc67   :  { %v1110_v24 = vmul.f32 %v1109_v13, %v3083_v42 }
 0xcc3   :  { %v1010_v9 = vpop.permute.xlu1 %1009 }
 0xcc4   :  { %v1012_v11 = vmul.f32 %v1010_v9, %v1003_v8 }
 0xcc6   :  { %1014 = vrot.lane.b32.xlu1 %v1012_v11, %s2784_s23 }
 0xcd5   :  { %v1113_v14 = vpop.permute.xlu0 %1112 }
 0xcd6   :  { %v1115_v15 = vmul.f32 %v1113_v14, %v1109_v13 }
 0xcd8   :  { %1117 = vrot.lane.b32.xlu0 %v1115_v15, %s2784_s23 }
 0xd38   :  { %v1015_v19 = vpop.permute.xlu1 %1014 }
 0xd39   :  { %v3122_v20 = vadd.f32 %v1015_v19, %v1007_v18 }
 0xd3b   :  { %2601 = vtanh.f32 %v3122_v20  ;;  %v1210_v57 = vrot.slane %v3122_v20, 6 }
 0xd45   :  { %v2602_v21 = vpop.eup %2601 }
 0xd46   :  { %1020 = vrot.lane.b32.xlu1 %v2602_v21, %s2783_s22 }
 0xd4a   :  { %v1118_v26 = vpop.permute.xlu0 %1117 }
 0xd4b   :  { %v1120_v27 = vadd.f32 %v1118_v26, %v1110_v24 }
 0xd4d   :  { %2603 = vtanh.f32 %v1120_v27 }
 0xd57   :  { %v2604_v28 = vpop.eup %2603 }
 0xd58   :  { %1123 = vrot.lane.b32.xlu0 %v2604_v28, %s2783_s22 }
 0xdb8   :  { %v1021_v29 = vpop.permute.xlu1 %1020 }
 0xdb9   :  { %v1023_v30 = vmul.f32 %v1021_v29, %v1003_v8 }
 0xdbb   :  { %1128 = vrot.lane.b32.xlu1 %v1023_v30, %s2784_s23 }
 0xdca   :  { %v1124_v25 = vpop.permute.xlu0 %1123 }
 0xdcb   :  { %v1126_v31 = vmul.f32 %v1124_v25, %v1109_v13 }
 0xdcd   :  { %v1848_v32 = vrot.slane %v1126_v31, 2  ;;  %1231 = vrot.lane.b32.xlu0 %v1126_v31, %s2783_s22 }
 0xdcf   :  { %v3132_v33 = vsel %vm1861_vm6, %v3094_v56, %v1848_v32 }
 0xe2d   :  { %v1129_v34 = vpop.permute.xlu1 %1128 }
 0xe2e   :  { %2281 = vmatmul.mubr.msk.f32.vlgmr.msra.gmra.mrb[8].mxu0 %vm213_vm2, %v1129_v34 }
 0xe2f   :  { %2490 = vmatpush3.bf16.msra.mxu0 %v2956_v38  ;;  %2299 = vmatprep.mubr.msk.f32.mxu0 %vm2781_vm0, %v2782_v1 }
 0xe30   :  { %2491 = vmatprep.subr.bf16.mxu0 %v2780_v0 }
 0xe33   :  { %2493 = vmatpush3.bf16.msra.mxu0 %v2959_v40 }
 0xe34   :  { %2494 = vmatprep.subr.bf16.mxu0 %v2780_v0 }
 0xe37   :  { %2496 = vmatpush3.bf16.msra.mxu0 %v2963_v43 }
 0xe38   :  { %2497 = vmatprep.subr.bf16.mxu0 %v2780_v0 }
 0xe3b   :  { %2499 = vmatpush3.bf16.msra.mxu0 %v2968_v47 }
 0xe3c   :  { %2518 = vmatprep.subr.bf16.mxu0 %v2780_v0 }
 0xe3f   :  { %v1232_v35 = vpop.permute.xlu0 %1231 }
 0xe40   :  { %v1234_v36 = vsel %vm213_vm2, %v1129_v34, %v1232_v35 }
 0xe41   :  { %2300 = vmatmul.mubr.msk.f32.vlgmr.msra.gmra.mrb[10].mxu0 %vm418_vm3, %v1234_v36 }
 0xe42   :  { %2520 = vmatpush3.bf16.msra.mxu0 %v2923_v10  ;;  %2340 = vmatprep.mubr.msk.f32.mxu0 %vm2781_vm0, %v2782_v1 }
 0xe43   :  { %2521 = vmatprep.subr.bf16.mxu0 %v2780_v0 }
 0xe46   :  { %2523 = vmatpush3.bf16.msra.mxu0 %v2927_v16 }
 0xe47   :  { %2524 = vmatprep.subr.bf16.mxu0 %v2780_v0 }
 0xf01   :  { %v1198_v37 = vpop.f32.mrb[8].mxu0 }
 0xf02   :  { %v1203_v39 = vrot.slane %v1198_v37, 6  ;;  %v2282_v41 = vpop.f32.mrb[9].mxu0 }
 0xf04   :  { %v1205_v42 = vadd.f32 %v1203_v39, %v2946_v23 }
 0xf06   :  { %2605 = vtanh.f32 %v1205_v42 }
 0xf10   :  { %v2606_v44 = vpop.eup %2605 }
 0xf11   :  { %1214 = vrot.lane.b32.xlu1 %v2606_v44, %s2783_s22  ;;  %v1207_v16 = vmul.f32 0.5, %v2606_v44 }
 0xf13   :  { %v1208_v49 = vadd.f32 0.5, %v1207_v16 }
 0xf14   :  { %v1304_v45 = vpop.f32.mrb[10].mxu0 }
 0xf15   :  { %v1305_v10 = vadd.f32 %v2992_v52, %v1304_v45  ;;  %v2301_v46 = vpop.f32.mrb[11].mxu0  ;;  %v1212_v22 = vmul.f32 %v1210_v57, %v1208_v49 }
 0xf17   :  { %2607 = vtanh.f32 %v1305_v10 }
 0xf21   :  { %v2608_v48 = vpop.eup %2607 }
 0xf22   :  { %1313 = vrot.lane.b32.xlu0 %v2608_v48, %s2783_s22  ;;  %v1309_v53 = vmul.f32 0.5, %v2608_v48 }
 0xf24   :  { %v1310_v54 = vadd.f32 0.5, %v1309_v53 }
 0xf26   :  { %v1311_v61 = vmul.f32 %v1310_v54, %v1120_v27 }
 0xf83   :  { %v1215_v50 = vpop.permute.xlu1 %1214 }
 0xf84   :  { %v1217_v51 = vmul.f32 %v1215_v50, %v1208_v49 }
 0xf86   :  { %1219 = vrot.lane.b32.xlu1 %v1217_v51, %s2784_s23 }
 0xf94   :  { %v1314_v55 = vpop.permute.xlu0 %1313 }
 0xf95   :  { %v1316_v56 = vmul.f32 %v1314_v55, %v1310_v54 }
 0xf97   :  { %1318 = vrot.lane.b32.xlu0 %v1316_v56, %s2784_s23 }
 0xff8   :  { %v1220_v58 = vpop.permute.xlu1 %1219 }
 0xff9   :  { %v3160_v59 = vadd.f32 %v1220_v58, %v1212_v22 }
 0xffb   :  { %2609 = vtanh.f32 %v3160_v59  ;;  %v1412_v36 = vrot.slane %v3160_v59, 6 }
0x1005   :  { %v2610_v60 = vpop.eup %2609 }
0x1006   :  { %1225 = vrot.lane.b32.xlu1 %v2610_v60, %s2783_s22 }
0x1009   :  { %v1319_v62 = vpop.permute.xlu0 %1318 }
0x100a   :  { %v3164_v63 = vadd.f32 %v1319_v62, %v1311_v61 }
0x100c   :  { %2611 = vtanh.f32 %v3164_v63 }
0x1016   :  { %v2612_v2 = vpop.eup %2611 }
0x1017   :  { %1324 = vrot.lane.b32.xlu0 %v2612_v2, %s2783_s22 }
0x1078   :  { %v1226_v3 = vpop.permute.xlu1 %1225 }
0x1079   :  { %v1228_v4 = vmul.f32 %v1226_v3, %v1208_v49 }
0x107b   :  { %v1329_v5 = vrot.slane %v1228_v4, 2  ;;  %1431 = vrot.lane.b32.xlu0 %v1228_v4, %s2784_s23 }
0x107d   :  { %1330 = vrot.lane.b32.xlu1 %v1329_v5, %s2784_s23 }
0x1089   :  { %v1325_v6 = vpop.permute.xlu0 %1324 }
0x108a   :  { %v3170_v7 = vmul.f32 %v1325_v6, %v1310_v54 }
0x108c   :  { %v1435_v8 = vrot.slane %v3170_v7, 6 }
0x108e   :  { %1436 = vrot.lane.b32.xlu1 %v1435_v8, %s2783_s22 }
0x10ed   :  { %v1432_v11 = vpop.permute.xlu0 %1431 }
0x10ef   :  { %v1331_v9 = vpop.permute.xlu1 %1330 }
0x10f0   :  { %2311 = vmatmul.mubr.msk.f32.vlgmr.msra.gmra.mrb[12].mxu1 %vm213_vm2, %v1331_v9 }
0x10f1   :  { %2508 = vmatpush3.bf16.msra.mxu1 %v2956_v38  ;;  %2329 = vmatprep.mubr.msk.f32.mxu1 %vm2781_vm0, %v2782_v1 }
0x10f2   :  { %2509 = vmatprep.subr.bf16.mxu1 %v2780_v0 }
0x10f5   :  { %2511 = vmatpush3.bf16.msra.mxu1 %v2959_v40 }
0x10f6   :  { %2512 = vmatprep.subr.bf16.mxu1 %v2780_v0 }
0x10f9   :  { %2514 = vmatpush3.bf16.msra.mxu1 %v2963_v43 }
0x10fa   :  { %2515 = vmatprep.subr.bf16.mxu1 %v2780_v0 }
0x10fd   :  { %2517 = vmatpush3.bf16.msra.mxu1 %v2968_v47 }
0x10fe   :  { %2536 = vmatprep.subr.bf16.mxu1 %v2780_v0 }
0x1100   :  { %v1437_v12 = vpop.permute.xlu1 %1436 }
0x1101   :  { %v1439_v13 = vsel %vm213_vm2, %v1432_v11, %v1437_v12 }
0x1102   :  { %v1441_v14 = vrot.slane %v1439_v13, 2 }
0x1104   :  { %2330 = vmatmul.mubr.msk.f32.vlgmr.msra.gmra.mrb[14].mxu1 %vm418_vm3, %v1441_v14 }
0x1105   :  { %2538 = vmatpush3.bf16.msra.mxu1 %v2956_v38  ;;  %2378 = vmatprep.mubr.msk.f32.mxu1 %vm2781_vm0, %v2782_v1 }
0x1106   :  { %2539 = vmatprep.subr.bf16.mxu1 %v2780_v0 }
0x1109   :  { %2541 = vmatpush3.bf16.msra.mxu1 %v2959_v40 }
0x110a   :  { %2542 = vmatprep.subr.bf16.mxu1 %v2780_v0 }
0x110d   :  { %2544 = vmatpush3.bf16.msra.mxu1 %v2963_v43 }
0x110e   :  { %2545 = vmatprep.subr.bf16.mxu1 %v2780_v0 }
0x1111   :  { %2547 = vmatpush3.bf16.msra.mxu1 %v2968_v47 }
0x11c3   :  { %v1400_v15 = vpop.f32.mrb[12].mxu1 }
0x11c4   :  { %v1405_v17 = vrot.slane %v1400_v15, 4  ;;  %v2312_v18 = vpop.f32.mrb[13].mxu1 }
0x11c6   :  { %v1407_v19 = vadd.f32 %v1405_v17, %v2946_v23 }
0x11c8   :  { %2613 = vtanh.f32 %v1407_v19 }
0x11d2   :  { %v2614_v20 = vpop.eup %2613 }
0x11d3   :  { %1416 = vrot.lane.b32.xlu0 %v2614_v20, %s2783_s22  ;;  %v1409_v28 = vmul.f32 0.5, %v2614_v20 }
0x11d5   :  { %v1410_v29 = vadd.f32 0.5, %v1409_v28 }
0x11d7   :  { %v1510_v21 = vpop.f32.mrb[14].mxu1  ;;  %v1414_v37 = vmul.f32 %v1412_v36, %v1410_v29 }
0x11d8   :  { %v1511_v24 = vadd.f32 %v2992_v52, %v1510_v21  ;;  %v2331_v26 = vpop.f32.mrb[15].mxu1 }
0x11da   :  { %2615 = vtanh.f32 %v1511_v24 }
0x11e4   :  { %v2616_v27 = vpop.eup %2615 }
0x11e5   :  { %1519 = vrot.lane.b32.xlu1 %v2616_v27, %s2783_s22  ;;  %v1515_v31 = vmul.f32 0.5, %v2616_v27 }
0x11e7   :  { %v1516_v32 = vadd.f32 0.5, %v1515_v31 }
0x11e9   :  { %v1517_v44 = vmul.f32 %v1516_v32, %v3164_v63 }
0x1245   :  { %v1417_v30 = vpop.permute.xlu0 %1416 }
0x1246   :  { %v1419_v25 = vmul.f32 %v1417_v30, %v1410_v29 }
0x1248   :  { %1421 = vrot.lane.b32.xlu0 %v1419_v25, %s2784_s23 }
0x1257   :  { %v1520_v34 = vpop.permute.xlu1 %1519 }
0x1258   :  { %v1522_v35 = vmul.f32 %v1520_v34, %v1516_v32 }
0x125a   :  { %1524 = vrot.lane.b32.xlu1 %v1522_v35, %s2784_s23 }
0x12ba   :  { %v1422_v39 = vpop.permute.xlu0 %1421 }
0x12bb   :  { %v1424_v41 = vadd.f32 %v1422_v39, %v1414_v37 }
0x12bd   :  { %2617 = vtanh.f32 %v1424_v41  ;;  %v1618_v6 = vrot.slane %v1424_v41, 6 }
0x12c7   :  { %v2618_v42 = vpop.eup %2617 }
0x12c8   :  { %1427 = vrot.lane.b32.xlu0 %v2618_v42, %s2783_s22 }
0x12cc   :  { %v1525_v45 = vpop.permute.xlu1 %1524 }
0x12cd   :  { %v1527_v10 = vadd.f32 %v1525_v45, %v1517_v44 }
0x12cf   :  { %2619 = vtanh.f32 %v1527_v10 }
0x12d9   :  { %v2620_v46 = vpop.eup %2619 }
0x12da   :  { %1530 = vrot.lane.b32.xlu1 %v2620_v46, %s2783_s22 }
0x133a   :  { %v1428_v48 = vpop.permute.xlu0 %1427 }
0x133b   :  { %v1430_v16 = vmul.f32 %v1428_v48, %v1410_v29  ;;  %v119_v48 = vld [vmem:[#allocation10 + $0x8] sm:$0xff] }
0x133d   :  { %v1535_v49 = vrot.slane %v1430_v16, 4  ;;  %1637 = vrot.lane.b32.xlu1 %v1430_v16, %s2784_s23  ;;  %v120_v16 = vld [vmem:[#allocation10 + $0x10] sm:$0xff] }
0x133f   :  { %1536 = vrot.lane.b32.xlu0 %v1535_v49, %s2784_s23 }
0x134c   :  { %v1531_v50 = vpop.permute.xlu1 %1530 }
0x134d   :  { %v3208_v51 = vmul.f32 %v1531_v50, %v1516_v32  ;;  %v121_v50 = vld [vmem:[#allocation10 + $0x18] sm:$0xff] }
0x134f   :  { %v1641_v53 = vrot.slane %v3208_v51, 4  ;;  %v1850_v20 = vrot.slane %v3208_v51, 6  ;;  %v2552_v51 = vpack.c.bf16 %v121_v50, %v120_v16 }
0x1351   :  { %1642 = vrot.lane.b32.xlu0 %v1641_v53, %s2783_s22  ;;  %v1863_v28 = vsel %vm1857_vm4, %v3170_v7, %v1850_v20 }
0x13af   :  { %v1638_v55 = vpop.permute.xlu1 %1637 }
0x13b1   :  { %v1537_v54 = vpop.permute.xlu0 %1536 }
0x13b2   :  { %2341 = vmatmul.mubr.msk.f32.vlgmr.msra.gmra.mrb[12].mxu0 %vm213_vm2, %v1537_v54 }
0x13b3   :  { %2526 = vmatpush3.bf16.msra.mxu0 %v2956_v38  ;;  %2359 = vmatprep.mubr.msk.f32.mxu0 %vm2781_vm0, %v2782_v1 }
0x13b4   :  { %2527 = vmatprep.subr.bf16.mxu0 %v2780_v0 }
0x13b7   :  { %2529 = vmatpush3.bf16.msra.mxu0 %v2959_v40 }
0x13b8   :  { %2530 = vmatprep.subr.bf16.mxu0 %v2780_v0 }
0x13bb   :  { %2532 = vmatpush3.bf16.msra.mxu0 %v2963_v43 }
0x13bc   :  { %2533 = vmatprep.subr.bf16.mxu0 %v2780_v0 }
0x13bf   :  { %2535 = vmatpush3.bf16.msra.mxu0 %v2968_v47 }
0x13c3   :  { %v1643_v56 = vpop.permute.xlu0 %1642 }
0x13c4   :  { %v1645_v57 = vsel %vm213_vm2, %v1638_v55, %v1643_v56 }
0x13c5   :  { %v1647_v38 = vrot.slane %v1645_v57, 4 }
0x13c7   :  { %2360 = vmatmul.mubr.msk.f32.vlgmr.msra.gmra.mrb[14].mxu0 %vm418_vm3, %v1647_v38  ;;  %v1997_v38 = vld [vmem:[%s3275_s7] ss:$0 sm:$0xff] }
0x1485   :  { %v1606_v1 = vpop.f32.mrb[12].mxu0 }
0x1486   :  { %v1611_v22 = vrot.slane %v1606_v1, 2  ;;  %v2342_v58 = vpop.f32.mrb[13].mxu0 }
0x1488   :  { %v1613_v40 = vadd.f32 %v1611_v22, %v2946_v23 }
0x148a   :  { %2621 = vtanh.f32 %v1613_v40 }
0x1494   :  { %v2622_v59 = vpop.eup %2621 }
0x1495   :  { %1622 = vrot.lane.b32.xlu0 %v2622_v59, %s2783_s22  ;;  %v1615_v61 = vmul.f32 0.5, %v2622_v59 }
0x1497   :  { %v1616_v62 = vadd.f32 0.5, %v1615_v61 }
0x1499   :  { %v1620_v8 = vmul.f32 %v1618_v6, %v1616_v62 }
0x149a   :  { %v1716_v43 = vpop.f32.mrb[14].mxu0 }
0x149b   :  { %v1717_v0 = vadd.f32 %v2992_v52, %v1716_v43  ;;  %v2361_v47 = vpop.f32.mrb[15].mxu0 }
0x149d   :  { %2623 = vtanh.f32 %v1717_v0 }
0x14a7   :  { %v2624_v60 = vpop.eup %2623 }
0x14a8   :  { %1725 = vrot.lane.b32.xlu1 %v2624_v60, %s2783_s22  ;;  %v1721_v3 = vmul.f32 0.5, %v2624_v60 }
0x14aa   :  { %v1722_v23 = vadd.f32 0.5, %v1721_v3 }
0x14ac   :  { %v1723_v13 = vmul.f32 %v1722_v23, %v1527_v10 }
0x1507   :  { %v1623_v63 = vpop.permute.xlu0 %1622 }
0x1508   :  { %v1625_v2 = vmul.f32 %v1623_v63, %v1616_v62 }
0x150a   :  { %1627 = vrot.lane.b32.xlu0 %v1625_v2, %s2784_s23 }
0x151a   :  { %v1726_v4 = vpop.permute.xlu1 %1725 }
0x151b   :  { %v1728_v5 = vmul.f32 %v1726_v4, %v1722_v23 }
0x151d   :  { %1730 = vrot.lane.b32.xlu1 %v1728_v5, %s2784_s23 }
0x157c   :  { %v1628_v9 = vpop.permute.xlu0 %1627 }
0x157d   :  { %v1630_v11 = vadd.f32 %v1628_v9, %v1620_v8 }
0x157f   :  { %2625 = vtanh.f32 %v1630_v11 }
0x1589   :  { %v2626_v12 = vpop.eup %2625 }
0x158a   :  { %1633 = vrot.lane.b32.xlu0 %v2626_v12, %s2783_s22 }
0x158f   :  { %v1731_v14 = vpop.permute.xlu1 %1730 }
0x1590   :  { %v1733_v15 = vadd.f32 %v1731_v14, %v1723_v13 }
0x1592   :  { %2627 = vtanh.f32 %v1733_v15 }
0x159c   :  { %v2628_v17 = vpop.eup %2627 }
0x159d   :  { %1736 = vrot.lane.b32.xlu1 %v2628_v17, %s2783_s22 }
0x15fc   :  { %v1634_v18 = vpop.permute.xlu0 %1633 }
0x15fd   :  { %v1636_v19 = vmul.f32 %v1634_v18, %v1616_v62 }
0x15ff   :  { %1741 = vrot.lane.b32.xlu1 %v1636_v19, %s2784_s23 }
0x160f   :  { %v1737_v21 = vpop.permute.xlu1 %1736 }
0x1610   :  { %v1739_v24 = vmul.f32 %v1737_v21, %v1722_v23 }
0x1612   :  { %v1745_v26 = vrot.slane %v1739_v24, 2  ;;  %v1852_v27 = vrot.slane %v1739_v24, 4 }
0x1614   :  { %1746 = vrot.lane.b32.xlu0 %v1745_v26, %s2783_s22  ;;  %v1864_v29 = vsel %vm1859_vm5, %v1863_v28, %v1852_v27 }
0x1671   :  { %v1742_v30 = vpop.permute.xlu1 %1741 }
0x1686   :  { %v1747_v25 = vpop.permute.xlu0 %1746 }
0x1687   :  { %v1749_v31 = vsel %vm213_vm2, %v1742_v30, %v1747_v25 }
0x1688   :  { %v1751_v32 = vrot.slane %v1749_v31, 6 }
0x168a   :  { %2379 = vmatmul.mubr.msk.f32.vlgmr.msra.gmra.mrb[16].mxu1 %vm418_vm3, %v1751_v32 }
0x175d   :  { %v1820_v34 = vpop.f32.mrb[16].mxu1 }
0x175e   :  { %v1821_v35 = vadd.f32 %v2992_v52, %v1820_v34  ;;  %v2380_v36 = vpop.f32.mrb[17].mxu1  ;;  %v118_v52 = vld [vmem:[#allocation10] sm:$0xff] }
0x175f   :  { %v2548_v49 = vpack.c.bf16 %v119_v48, %v118_v52 }
0x1760   :  { %2629 = vtanh.f32 %v1821_v35 }
0x1761   :  { %2549 = vmatprep.subr.bf16.mxu0 %v2548_v49 }
0x1762   :  { %2551 = vmatpush3.bf16.msra.mxu0 %v2548_v49 }
0x1763   :  { %2553 = vmatprep.subr.bf16.mxu0 %v2552_v51 }
0x1766   :  { %2555 = vmatpush3.bf16.msra.mxu0 %v2552_v51 }
0x176a   :  { %v2630_v37 = vpop.eup %2629 }
0x176b   :  { %1829 = vrot.lane.b32.xlu1 %v2630_v37, %s2783_s22  ;;  %v1825_v7 = vmul.f32 0.5, %v2630_v37 }
0x176d   :  { %v1826_v39 = vadd.f32 0.5, %v1825_v7 }
0x176f   :  { %v1827_v44 = vmul.f32 %v1826_v39, %v1733_v15 }
0x17dd   :  { %v1830_v41 = vpop.permute.xlu1 %1829 }
0x17de   :  { %v1832_v42 = vmul.f32 %v1830_v41, %v1826_v39 }
0x17e0   :  { %1834 = vrot.lane.b32.xlu0 %v1832_v42, %s2784_s23 }
0x17e4   :  { %1874 = vrot.lane.b32.xlu0 %v3132_v33, %s2784_s23 }
0x1852   :  { %v1835_v45 = vpop.permute.xlu0 %1834 }
0x1853   :  { %v1837_v10 = vadd.f32 %v1835_v45, %v1827_v44 }
0x1855   :  { %2631 = vtanh.f32 %v1837_v10 }
0x1856   :  { %v1875_v46 = vpop.permute.xlu0 %1874 }
0x1857   :  { %2389 = vmatprep.mubr.msk.f32.mxu0 %vm213_vm2, %v1875_v46 }
0x185f   :  { %v2632_v53 = vpop.eup %2631 }
0x1860   :  { %1840 = vrot.lane.b32.xlu1 %v2632_v53, %s2783_s22 }
0x18d2   :  { %v1841_v33 = vpop.permute.xlu1 %1840 }
0x18d3   :  { %v1843_v54 = vmul.f32 %v1841_v33, %v1826_v39 }
0x18d5   :  { %v1855_v55 = vrot.slane %v1843_v54, 2 }
0x18d7   :  { %v1865_v56 = vsel %vm1861_vm6, %v1864_v29, %v1855_v55 }
0x18d8   :  { %1876 = vrot.lane.b32.xlu1 %v1865_v56, %s2784_s23 }
0x194a   :  { %v1877_v57 = vpop.permute.xlu1 %1876 }
0x194b   :  { %2390 = vmatmul.mubr.msk.f32.vlgmr.msra.gmra.mrb[16].mxu0 %vm213_vm2, %v1877_v57 }
0x1a1e   :  { %v2391_v1 = vpop.f32.mrb[16].mxu0 }
0x1a1f   :  { %v1954_v22 = vadd.f32 %v2391_v1, %v1997_v38  ;;  %v1948_v58 = vpop.f32.mrb[17].mxu0 }
0x1a20   :  { %v1949_v40 = vadd.f32 %v1997_v38, %v1948_v58 }
0x1a21   :  { %1958 = vst [vmem:[#allocation11 + $0x8] sm:$0xff] %v1954_v22 }
0x1a22   :  { %1957 = vst [vmem:[#allocation11] sm:$0xff] %v1949_v40 }
0x1a23   :  { %2754 = shalt.err (!%p2751_p2)
}
0x1a24   :  { %s2755_s7 = scalar_lea.hbm %s3276_s8, 256 }
0x1a25   :  { %p2756_p3 = scmp.ne.s32.totalorder %s3276_s8, %s2755_s7  ;;  %p2759_p4 = scmp.lt.u32.totalorder %s2755_s7, %s3276_s8 }
0x1a27   :  { %p2761_p5 = pnand %p2759_p4, %p2756_p3 }
0x1a29   :  { %2764 = shalt.err (!%p2761_p5)
}
0x1a2a   :  { %1970 = dma.vmem_to_hbm [thread:$0]  %s1965_s27, 256, %s3276_s8, [#allocation4], %s2775_s17, %s2775_s17, %s2776_s18  }
0x1a2b   :  { %2771 = dma.done.wait [#allocation4], 256  }
0x1a2c   :  { %2772 = vsyncadd [#allocation4], 4294967040 }
0x1a2d   :  { %1974 = vsyncpa [#allocation3], 1 }
0x1a2e   :  { %1975 = vsyncpa [#allocation6], 1 }
0x1a2f   :  { %1976 = vsyncpa [#allocation9], 1 }
0x1a30   :  { %1977 = vsyncpa [#allocation4], 1 }

</bundles_post_ra>
